<compile_context>
chip_gen: v7x
topology: tpu7x:2x2x1
jax: 0.10.0
libtpu: 0.0.40
codegen_flags: <defaults>
</compile_context>

<pallas_src>
import functools
import math

import jax
import jax.numpy as jnp
from jax.experimental import pallas as pl
from jax.experimental.pallas import tpu as pltpu


# --------------------------------------------------------------------------
# constant-slab layout (all row starts 8-aligned, width padded to 128 lanes)
# --------------------------------------------------------------------------
def _slab_layout(time_dim, in_dim, inter_dim, out_dim):
    r8 = lambda n: ((n + 7) // 8) * 8
    r_wqkv = 0                                    # rows [0, in_dim)       lanes [0, 3*inter)
    r_wout = r8(r_wqkv + in_dim)                  # rows [., +out_dim)     lanes [0, inter)
    r_bqkv = r8(r_wout + out_dim)                 # 1 row                  lanes [0, 3*inter)
    r_bout = r8(r_bqkv + 1)                       # rows [., +out_dim)     lane 0 (column)
    r_slope = r8(r_bout + out_dim)                # 1 row                  lane 0
    r_dg = r8(r_slope + 1)                        # rows [., +T)           lanes [0, T)
    rows = r8(r_dg + time_dim)
    width = ((max(3 * inter_dim, inter_dim, time_dim) + 127) // 128) * 128
    return dict(r_wout=r_wout, r_bqkv=r_bqkv, r_bout=r_bout,
                r_slope=r_slope, r_dg=r_dg, rows=rows, width=width)


# --------------------------------------------------------------------------
# kernel: one grid step = `tb` independent ParallelRetention instances
# --------------------------------------------------------------------------
def paret_kernel(x_ref, slab_ref, out_ref, yn_ref, *,
                 tb, time_dim, in_dim, inter_dim, out_dim,
                 r_wout, r_bqkv, r_bout, r_slope, r_dg):
    T = time_dim
    x = x_ref[...]                                                   # (tb*T, in_dim)

    # constants: static slices of the resident slab (row starts 8-aligned)
    w_qkv = slab_ref[0:in_dim, 0:3 * inter_dim]                      # (in, 3*inter)
    w_out_t = slab_ref[r_wout:r_wout + out_dim, 0:inter_dim]         # (out, inter), GN-folded
    b_qkv = slab_ref[r_bqkv:r_bqkv + 1, 0:3 * inter_dim]             # (1, 3*inter)
    b_out = slab_ref[r_bout:r_bout + out_dim, 0:1]                   # (out, 1) column
    slope = slab_ref[r_slope:r_slope + 1, 0:1]                       # (1, 1) PReLU slope
    dg = slab_ref[r_dg:r_dg + T, 0:T]                                # (T, T) decay matrix

    # fused Q|K|V projection for ALL tb instances: one MXU matmul + one bias add
    qkv = jnp.dot(x, w_qkv, preferred_element_type=jnp.float32) + b_qkv
    q_all = qkv[:, 0 * inter_dim:1 * inter_dim]
    k_all = qkv[:, 1 * inter_dim:2 * inter_dim]
    v_all = qkv[:, 2 * inter_dim:3 * inter_dim]

    # per-instance retention mixing + GroupNorm(1, inter) over the (inter, T) view
    for i in range(tb):                                              # static unroll (tiny)
        rows = slice(i * T, (i + 1) * T)
        qi, ki, vi = q_all[rows], k_all[rows], v_all[rows]
        # Q @ K^T as last-dim/last-dim contraction (no explicit k transpose)
        s = jax.lax.dot_general(qi, ki, (((1,), (1,)), ((), ())),
                                preferred_element_type=jnp.float32)  # (T, T)
        yi = jnp.dot(dg * s, vi, preferred_element_type=jnp.float32)  # (T, inter)
        mu = jnp.mean(yi)
        var = jnp.mean((yi - mu) ** 2)                               # two-pass (matches torch)
        yn_ref[rows, :] = (yi - mu) * jax.lax.rsqrt(var + 1e-5)

    # GN affine is pre-folded into w_out_t / b_out.  Contract over inter and
    # emit the block TRANSPOSED: (out_dim, tb*T) = (16, 128) -> lane-dense store.
    z = jax.lax.dot_general(w_out_t, yn_ref[...], (((1,), (1,)), ((), ())),
                            preferred_element_type=jnp.float32)      # (out, tb*T)
    z = z + b_out
    out_ref[...] = jnp.where(z >= 0.0, z, slope * z)                 # PReLU


# --------------------------------------------------------------------------
# one-time packing / folding of PyTorch-shaped params (NOT per step)
# --------------------------------------------------------------------------
def pack_params(params, *, time_dim):
    inter_dim, in_dim = params["wq"].shape
    out_dim = params["wr"].shape[0]
    lay = _slab_layout(time_dim, in_dim, inter_dim, out_dim)
    f32 = jnp.float32

    # fused, pre-transposed QKV weight: (in_dim, 3*inter_dim)
    w_qkv = jnp.concatenate(
        [params["wq"].T, params["wk"].T, params["wv"].T], axis=1).astype(f32)

    # fold GroupNorm(1, inter) affine into the output projection:
    #   (yn*gn_w + gn_b) @ Wr^T + br == yn @ (gn_w[:,None]*Wr^T) + (Wr@gn_b + br)
    # stored transposed: w_out_t[o, c] = gn_w[c] * Wr[o, c]
    w_out_t = params["wr"].astype(f32) * params["gn_w"].astype(f32)[None, :]
    b_out = params["wr"].astype(f32) @ params["gn_b"].astype(f32) + params["br"].astype(f32)
    b_qkv = jnp.concatenate(
        [params["bq"], params["bk"], params["bv"]]).astype(f32)

    slab = jnp.zeros((lay["rows"], lay["width"]), f32)
    slab = slab.at[0:in_dim, 0:3 * inter_dim].set(w_qkv)
    slab = slab.at[lay["r_wout"]:lay["r_wout"] + out_dim, 0:inter_dim].set(w_out_t)
    slab = slab.at[lay["r_bqkv"], 0:3 * inter_dim].set(b_qkv)
    slab = slab.at[lay["r_bout"]:lay["r_bout"] + out_dim, 0].set(b_out)
    slab = slab.at[lay["r_slope"], 0].set(params["prelu"].astype(f32)[0])
    # d_gamma slot (rows r_dg:r_dg+T) is patched per call (it is a forward arg).

    return dict(slab=slab, time_dim=time_dim, in_dim=in_dim,
                inter_dim=inter_dim, out_dim=out_dim)


# --------------------------------------------------------------------------
# jitted forward: pad batch, build slab, run the grid, untangle the layout
# --------------------------------------------------------------------------
@functools.partial(jax.jit, static_argnames=("time_dim", "in_dim", "inter_dim",
                                             "out_dim", "num_node", "tb"))
def _paret_forward(xb, d_gamma, slab0, *, time_dim, in_dim, inter_dim,
                   out_dim, num_node, tb):
    B = xb.shape[0]
    T = time_dim
    lay = _slab_layout(T, in_dim, inter_dim, out_dim)

    # patch the call-time decay matrix into the constant slab (tiny copy)
    slab = jax.lax.dynamic_update_slice(
        slab0, d_gamma.astype(jnp.float32), (lay["r_dg"], 0))

    # flatten (B, T, node, feat) -> rows, pad B up to a multiple of tb
    x_flat = xb.astype(jnp.float32).reshape(B, T, in_dim)
    b_pad = ((B + tb - 1) // tb) * tb
    if b_pad != B:
        x_flat = jnp.concatenate(
            [x_flat, jnp.zeros((b_pad - B, T, in_dim), jnp.float32)], axis=0)
    x_flat = x_flat.reshape(b_pad * T, in_dim)

    kernel = functools.partial(
        paret_kernel, tb=tb, time_dim=T, in_dim=in_dim, inter_dim=inter_dim,
        out_dim=out_dim, r_wout=lay["r_wout"], r_bqkv=lay["r_bqkv"],
        r_bout=lay["r_bout"], r_slope=lay["r_slope"], r_dg=lay["r_dg"])

    out_t = pl.pallas_call(
        kernel,
        out_shape=jax.ShapeDtypeStruct((out_dim, b_pad * T), jnp.float32),
        grid_spec=pltpu.PrefetchScalarGridSpec(
            num_scalar_prefetch=0,
            grid=(b_pad // tb,),
            in_specs=[
                # streamed activations: one (tb*T, in_dim) block per grid step
                pl.BlockSpec((tb * T, in_dim), lambda b: (b, 0)),
                # resident constant slab: same block every step -> DMA'd once
                pl.BlockSpec((lay["rows"], lay["width"]), lambda b: (0, 0)),
            ],
            # lane-dense output block: (out_dim, tb*T) = (16, 128)
            out_specs=pl.BlockSpec((out_dim, tb * T), lambda b: (0, b)),
            scratch_shapes=[pltpu.VMEM((tb * T, inter_dim), jnp.float32)],
        ),
        compiler_params=pltpu.CompilerParams(
            dimension_semantics=("parallel",),   # v7x: split batch over 2 TCs
        ),
    )(x_flat, slab)

    # untangle layout outside the kernel (cheap XLA transpose on a tiny array)
    out = out_t.T.reshape(b_pad, T * out_dim)[:B]        # row g = torch .view order
    return out.reshape(B, num_node, (T * out_dim) // num_node)


def parallel_retention_batched(xb, d_gamma, packed):
    """xb: (B, time_dim, num_node, node_feat) -> (B, num_node, T*out/num_node)."""
    T = packed["time_dim"]
    num_node = xb.shape[2]
    tb = 128 // math.gcd(128, T)     # smallest tb with (tb*T) % 128 == 0 (lane-dense out)
    return _paret_forward(xb, d_gamma, packed["slab"],
                          time_dim=T, in_dim=packed["in_dim"],
                          inter_dim=packed["inter_dim"],
                          out_dim=packed["out_dim"],
                          num_node=num_node, tb=tb)


def parallel_retention(x, d_gamma, packed):
    """Single-instance forward mirroring ParallelRetention.forward exactly."""
    return parallel_retention_batched(x[None], d_gamma, packed)[0]


# --------------------------------------------------------------------------
# pure-JAX reference (mirrors the PyTorch forward, no folding)
# --------------------------------------------------------------------------
def parallel_retention_ref(x, d_gamma, params, *, time_dim):
    num_node = x.shape[1]
    x2 = x.reshape(time_dim, -1).astype(jnp.float32)
    q = x2 @ params["wq"].T + params["bq"]
    k = x2 @ params["wk"].T + params["bk"]
    v = x2 @ params["wv"].T + params["bv"]
    y = (d_gamma * (q @ k.T)) @ v                                    # (T, inter)
    mean = jnp.mean(y)
    var = jnp.mean((y - mean) ** 2)
    yn = (y - mean) / jnp.sqrt(var + 1e-5)
    yn = yn * params["gn_w"][None, :] + params["gn_b"][None, :]
    z = yn @ params["wr"].T + params["br"]
    out = jnp.where(z >= 0.0, z, params["prelu"][0] * z)
    return out.reshape(num_node, -1)


if __name__ == "__main__":
    # Shapes consistent with the module: x per instance is (T, num_node, node_feat)
    time_dim = 8
    num_node = 4
    node_feat = 8
    in_dim = num_node * node_feat       # 32
    inter_dim = 32
    out_dim = 16
    batch = 64                          # many independent PaRet instances per call

    key = jax.random.PRNGKey(0)
    kx, kq, kk, kv, kr, kg1, kg2 = jax.random.split(key, 7)

    xb = jax.random.normal(kx, (batch, time_dim, num_node, node_feat), jnp.float32)

    # retention decay matrix d_gamma: gamma^(n-m) for n >= m, else 0
    gamma = 0.9
    n_idx = jnp.arange(time_dim)[:, None]
    m_idx = jnp.arange(time_dim)[None, :]
    d_gamma = jnp.where(n_idx >= m_idx, gamma ** (n_idx - m_idx), 0.0).astype(jnp.float32)

    # PyTorch-shaped params (Linear weight = (out, in)); GN affine non-trivial
    params = {
        "wq": 0.1 * jax.random.normal(kq, (inter_dim, in_dim), dtype=jnp.float32),
        "bq": jnp.zeros((inter_dim,), jnp.float32),
        "wk": 0.1 * jax.random.normal(kk, (inter_dim, in_dim), dtype=jnp.float32),
        "bk": jnp.zeros((inter_dim,), jnp.float32),
        "wv": 0.1 * jax.random.normal(kv, (inter_dim, in_dim), dtype=jnp.float32),
        "bv": jnp.zeros((inter_dim,), jnp.float32),
        "wr": 0.1 * jax.random.normal(kr, (out_dim, inter_dim), dtype=jnp.float32),
        "br": jnp.zeros((out_dim,), jnp.float32),
        "gn_w": 1.0 + 0.1 * jax.random.normal(kg1, (inter_dim,), dtype=jnp.float32),
        "gn_b": 0.1 * jax.random.normal(kg2, (inter_dim,), dtype=jnp.float32),
        "prelu": jnp.array([0.25], jnp.float32),            # PReLU default init
    }

    packed = pack_params(params, time_dim=time_dim)          # one-time packing

    # batched path (the fast path)
    out_b = jax.block_until_ready(parallel_retention_batched(xb, d_gamma, packed))
    ref_b = jax.vmap(
        lambda xi: parallel_retention_ref(xi, d_gamma, params, time_dim=time_dim))(xb)
    assert out_b.shape == (batch, num_node, time_dim * out_dim // num_node)
    assert jnp.allclose(out_b, ref_b, atol=1e-3, rtol=1e-3), "batched mismatch vs reference"

    # single-instance path (exact module signature)
    out_1 = jax.block_until_ready(parallel_retention(xb[0], d_gamma, packed))
    assert out_1.shape == (num_node, time_dim * out_dim // num_node)
    assert jnp.allclose(out_1, ref_b[0], atol=1e-3, rtol=1e-3), "single-instance mismatch"

    print("KERNEL_OK")
</pallas_src>

<mosaic_0001>
module attributes {stable_mosaic.version = 11 : i64} {
  func.func @paret_kernel(%arg0: i32, %arg1: memref<128x32xf32, #tpu.memory_space<vmem>>, %arg2: memref<88x128xf32, #tpu.memory_space<vmem>>, %arg3: memref<16x128xf32, #tpu.memory_space<vmem>>, %arg4: memref<128x32xf32, #tpu.memory_space<vmem>>) attributes {dimension_semantics = [#tpu.dimension_semantics<parallel>], iteration_bounds = array<i64: 4>, scalar_prefetch = 0 : i64, scratch_operands = 1 : i64, tpu.core_type = #tpu.core_type<tc>, window_params = [{transform_indices = @transform_0, window_bounds = array<i64: 128, 32>}, {pipeline_mode = #tpu.pipeline_mode<synchronous>, transform_indices = @transform_1, window_bounds = array<i64: 88, 128>}, {transform_indices = @transform_2, window_bounds = array<i64: 16, 128>}]} {
    %c0 = arith.constant 0 : index
    %c0_0 = arith.constant 0 : index
    %0 = vector.load %arg1[%c0, %c0_0] : memref<128x32xf32, #tpu.memory_space<vmem>>, vector<128x32xf32>
    %c0_1 = arith.constant 0 : index
    %c0_2 = arith.constant 0 : index
    %1 = vector.load %arg2[%c0_1, %c0_2] : memref<88x128xf32, #tpu.memory_space<vmem>>, vector<32x96xf32>
    %c32 = arith.constant 32 : index
    %c0_3 = arith.constant 0 : index
    %2 = vector.load %arg2[%c32, %c0_3] : memref<88x128xf32, #tpu.memory_space<vmem>>, vector<16x32xf32>
    %c48 = arith.constant 48 : index
    %c0_4 = arith.constant 0 : index
    %3 = vector.load %arg2[%c48, %c0_4] : memref<88x128xf32, #tpu.memory_space<vmem>>, vector<1x96xf32>
    %c56 = arith.constant 56 : index
    %c0_5 = arith.constant 0 : index
    %4 = vector.load %arg2[%c56, %c0_5] : memref<88x128xf32, #tpu.memory_space<vmem>>, vector<16x1xf32>
    %c72 = arith.constant 72 : index
    %c0_6 = arith.constant 0 : index
    %5 = vector.load %arg2[%c72, %c0_6] : memref<88x128xf32, #tpu.memory_space<vmem>>, vector<1x1xf32>
    %c80 = arith.constant 80 : index
    %c0_7 = arith.constant 0 : index
    %6 = vector.load %arg2[%c80, %c0_7] : memref<88x128xf32, #tpu.memory_space<vmem>>, vector<8x8xf32>
    %cst = arith.constant dense<0.000000e+00> : vector<128x96xf32>
    %7 = tpu.matmul %0, %1, %cst {dimension_numbers = #tpu.dot_dimension_numbers<[1], [0], [0], [1], [0, 0, 1, 1], [], []>} : vector<128x32xf32>, vector<32x96xf32>, vector<128x96xf32> -> vector<128x96xf32>
    %8 = vector.broadcast %3 : vector<1x96xf32> to vector<128x96xf32>
    %9 = arith.addf %7, %8 : vector<128x96xf32>
    %10 = vector.extract_strided_slice %9 {offsets = [0, 0], sizes = [128, 32], strides = [1, 1]} : vector<128x96xf32> to vector<128x32xf32>
    %11 = vector.extract_strided_slice %9 {offsets = [0, 32], sizes = [128, 32], strides = [1, 1]} : vector<128x96xf32> to vector<128x32xf32>
    %12 = vector.extract_strided_slice %9 {offsets = [0, 64], sizes = [128, 32], strides = [1, 1]} : vector<128x96xf32> to vector<128x32xf32>
    %13 = vector.extract_strided_slice %10 {offsets = [0, 0], sizes = [8, 32], strides = [1, 1]} : vector<128x32xf32> to vector<8x32xf32>
    %14 = vector.extract_strided_slice %11 {offsets = [0, 0], sizes = [8, 32], strides = [1, 1]} : vector<128x32xf32> to vector<8x32xf32>
    %15 = vector.extract_strided_slice %12 {offsets = [0, 0], sizes = [8, 32], strides = [1, 1]} : vector<128x32xf32> to vector<8x32xf32>
    %cst_8 = arith.constant dense<0.000000e+00> : vector<8x8xf32>
    %16 = tpu.matmul %13, %14, %cst_8 {dimension_numbers = #tpu.dot_dimension_numbers<[1], [1], [0], [0], [0, 0, 1, 0], [], []>} : vector<8x32xf32>, vector<8x32xf32>, vector<8x8xf32> -> vector<8x8xf32>
    %17 = arith.mulf %6, %16 : vector<8x8xf32>
    %cst_9 = arith.constant dense<0.000000e+00> : vector<8x32xf32>
    %18 = tpu.matmul %17, %15, %cst_9 {dimension_numbers = #tpu.dot_dimension_numbers<[1], [0], [0], [1], [0, 0, 1, 1], [], []>} : vector<8x8xf32>, vector<8x32xf32>, vector<8x32xf32> -> vector<8x32xf32>
    %19 = vector.shape_cast %18 : vector<8x32xf32> to vector<1x8x32xf32>
    %cst_10 = arith.constant dense<0.000000e+00> : vector<1xf32>
    %20 = vector.multi_reduction <add>, %19, %cst_10 [1, 2] : vector<1x8x32xf32> to vector<1xf32>
    %21 = vector.shape_cast %20 : vector<1xf32> to vector<1x1x1xf32>
    %22 = vector.extract %21[0, 0, 0] : f32 from vector<1x1x1xf32>
    %cst_11 = arith.constant 2.560000e+02 : f32
    %23 = arith.divf %22, %cst_11 : f32
    %24 = vector.broadcast %23 : f32 to vector<8x32xf32>
    %25 = arith.subf %18, %24 : vector<8x32xf32>
    %26 = arith.mulf %25, %25 : vector<8x32xf32>
    %27 = vector.shape_cast %26 : vector<8x32xf32> to vector<1x8x32xf32>
    %cst_12 = arith.constant dense<0.000000e+00> : vector<1xf32>
    %28 = vector.multi_reduction <add>, %27, %cst_12 [1, 2] : vector<1x8x32xf32> to vector<1xf32>
    %29 = vector.shape_cast %28 : vector<1xf32> to vector<1x1x1xf32>
    %30 = vector.extract %29[0, 0, 0] : f32 from vector<1x1x1xf32>
    %cst_13 = arith.constant 2.560000e+02 : f32
    %31 = arith.divf %30, %cst_13 : f32
    %32 = vector.broadcast %23 : f32 to vector<8x32xf32>
    %33 = arith.subf %18, %32 : vector<8x32xf32>
    %cst_14 = arith.constant 9.99999974E-6 : f32
    %34 = arith.addf %31, %cst_14 : f32
    %35 = math.rsqrt %34 : f32
    %36 = vector.broadcast %35 : f32 to vector<8x32xf32>
    %37 = arith.mulf %33, %36 : vector<8x32xf32>
    %c0_15 = arith.constant 0 : index
    %c0_16 = arith.constant 0 : index
    %38 = vector.load %arg4[%c0_15, %c0_16] : memref<128x32xf32, #tpu.memory_space<vmem>>, vector<8x32xf32>
    tpu.vector_store %arg4[%c0_15, %c0_16], %37 {strides = array<i32>} : memref<128x32xf32, #tpu.memory_space<vmem>>, vector<8x32xf32>,
    %39 = vector.extract_strided_slice %10 {offsets = [8, 0], sizes = [8, 32], strides = [1, 1]} : vector<128x32xf32> to vector<8x32xf32>
    %40 = vector.extract_strided_slice %11 {offsets = [8, 0], sizes = [8, 32], strides = [1, 1]} : vector<128x32xf32> to vector<8x32xf32>
    %41 = vector.extract_strided_slice %12 {offsets = [8, 0], sizes = [8, 32], strides = [1, 1]} : vector<128x32xf32> to vector<8x32xf32>
    %cst_17 = arith.constant dense<0.000000e+00> : vector<8x8xf32>
    %42 = tpu.matmul %39, %40, %cst_17 {dimension_numbers = #tpu.dot_dimension_numbers<[1], [1], [0], [0], [0, 0, 1, 0], [], []>} : vector<8x32xf32>, vector<8x32xf32>, vector<8x8xf32> -> vector<8x8xf32>
    %43 = arith.mulf %6, %42 : vector<8x8xf32>
    %cst_18 = arith.constant dense<0.000000e+00> : vector<8x32xf32>
    %44 = tpu.matmul %43, %41, %cst_18 {dimension_numbers = #tpu.dot_dimension_numbers<[1], [0], [0], [1], [0, 0, 1, 1], [], []>} : vector<8x8xf32>, vector<8x32xf32>, vector<8x32xf32> -> vector<8x32xf32>
    %45 = vector.shape_cast %44 : vector<8x32xf32> to vector<1x8x32xf32>
    %cst_19 = arith.constant dense<0.000000e+00> : vector<1xf32>
    %46 = vector.multi_reduction <add>, %45, %cst_19 [1, 2] : vector<1x8x32xf32> to vector<1xf32>
    %47 = vector.shape_cast %46 : vector<1xf32> to vector<1x1x1xf32>
    %48 = vector.extract %47[0, 0, 0] : f32 from vector<1x1x1xf32>
    %cst_20 = arith.constant 2.560000e+02 : f32
    %49 = arith.divf %48, %cst_20 : f32
    %50 = vector.broadcast %49 : f32 to vector<8x32xf32>
    %51 = arith.subf %44, %50 : vector<8x32xf32>
    %52 = arith.mulf %51, %51 : vector<8x32xf32>
    %53 = vector.shape_cast %52 : vector<8x32xf32> to vector<1x8x32xf32>
    %cst_21 = arith.constant dense<0.000000e+00> : vector<1xf32>
    %54 = vector.multi_reduction <add>, %53, %cst_21 [1, 2] : vector<1x8x32xf32> to vector<1xf32>
    %55 = vector.shape_cast %54 : vector<1xf32> to vector<1x1x1xf32>
    %56 = vector.extract %55[0, 0, 0] : f32 from vector<1x1x1xf32>
    %cst_22 = arith.constant 2.560000e+02 : f32
    %57 = arith.divf %56, %cst_22 : f32
    %58 = vector.broadcast %49 : f32 to vector<8x32xf32>
    %59 = arith.subf %44, %58 : vector<8x32xf32>
    %cst_23 = arith.constant 9.99999974E-6 : f32
    %60 = arith.addf %57, %cst_23 : f32
    %61 = math.rsqrt %60 : f32
    %62 = vector.broadcast %61 : f32 to vector<8x32xf32>
    %63 = arith.mulf %59, %62 : vector<8x32xf32>
    %c8 = arith.constant 8 : index
    %c0_24 = arith.constant 0 : index
    %64 = vector.load %arg4[%c8, %c0_24] : memref<128x32xf32, #tpu.memory_space<vmem>>, vector<8x32xf32>
    tpu.vector_store %arg4[%c8, %c0_24], %63 {strides = array<i32>} : memref<128x32xf32, #tpu.memory_space<vmem>>, vector<8x32xf32>,
    %65 = vector.extract_strided_slice %10 {offsets = [16, 0], sizes = [8, 32], strides = [1, 1]} : vector<128x32xf32> to vector<8x32xf32>
    %66 = vector.extract_strided_slice %11 {offsets = [16, 0], sizes = [8, 32], strides = [1, 1]} : vector<128x32xf32> to vector<8x32xf32>
    %67 = vector.extract_strided_slice %12 {offsets = [16, 0], sizes = [8, 32], strides = [1, 1]} : vector<128x32xf32> to vector<8x32xf32>
    %cst_25 = arith.constant dense<0.000000e+00> : vector<8x8xf32>
    %68 = tpu.matmul %65, %66, %cst_25 {dimension_numbers = #tpu.dot_dimension_numbers<[1], [1], [0], [0], [0, 0, 1, 0], [], []>} : vector<8x32xf32>, vector<8x32xf32>, vector<8x8xf32> -> vector<8x8xf32>
    %69 = arith.mulf %6, %68 : vector<8x8xf32>
    %cst_26 = arith.constant dense<0.000000e+00> : vector<8x32xf32>
    %70 = tpu.matmul %69, %67, %cst_26 {dimension_numbers = #tpu.dot_dimension_numbers<[1], [0], [0], [1], [0, 0, 1, 1], [], []>} : vector<8x8xf32>, vector<8x32xf32>, vector<8x32xf32> -> vector<8x32xf32>
    %71 = vector.shape_cast %70 : vector<8x32xf32> to vector<1x8x32xf32>
    %cst_27 = arith.constant dense<0.000000e+00> : vector<1xf32>
    %72 = vector.multi_reduction <add>, %71, %cst_27 [1, 2] : vector<1x8x32xf32> to vector<1xf32>
    %73 = vector.shape_cast %72 : vector<1xf32> to vector<1x1x1xf32>
    %74 = vector.extract %73[0, 0, 0] : f32 from vector<1x1x1xf32>
    %cst_28 = arith.constant 2.560000e+02 : f32
    %75 = arith.divf %74, %cst_28 : f32
    %76 = vector.broadcast %75 : f32 to vector<8x32xf32>
    %77 = arith.subf %70, %76 : vector<8x32xf32>
    %78 = arith.mulf %77, %77 : vector<8x32xf32>
    %79 = vector.shape_cast %78 : vector<8x32xf32> to vector<1x8x32xf32>
    %cst_29 = arith.constant dense<0.000000e+00> : vector<1xf32>
    %80 = vector.multi_reduction <add>, %79, %cst_29 [1, 2] : vector<1x8x32xf32> to vector<1xf32>
    %81 = vector.shape_cast %80 : vector<1xf32> to vector<1x1x1xf32>
    %82 = vector.extract %81[0, 0, 0] : f32 from vector<1x1x1xf32>
    %cst_30 = arith.constant 2.560000e+02 : f32
    %83 = arith.divf %82, %cst_30 : f32
    %84 = vector.broadcast %75 : f32 to vector<8x32xf32>
    %85 = arith.subf %70, %84 : vector<8x32xf32>
    %cst_31 = arith.constant 9.99999974E-6 : f32
    %86 = arith.addf %83, %cst_31 : f32
    %87 = math.rsqrt %86 : f32
    %88 = vector.broadcast %87 : f32 to vector<8x32xf32>
    %89 = arith.mulf %85, %88 : vector<8x32xf32>
    %c16 = arith.constant 16 : index
    %c0_32 = arith.constant 0 : index
    %90 = vector.load %arg4[%c16, %c0_32] : memref<128x32xf32, #tpu.memory_space<vmem>>, vector<8x32xf32>
    tpu.vector_store %arg4[%c16, %c0_32], %89 {strides = array<i32>} : memref<128x32xf32, #tpu.memory_space<vmem>>, vector<8x32xf32>,
    %91 = vector.extract_strided_slice %10 {offsets = [24, 0], sizes = [8, 32], strides = [1, 1]} : vector<128x32xf32> to vector<8x32xf32>
    %92 = vector.extract_strided_slice %11 {offsets = [24, 0], sizes = [8, 32], strides = [1, 1]} : vector<128x32xf32> to vector<8x32xf32>
    %93 = vector.extract_strided_slice %12 {offsets = [24, 0], sizes = [8, 32], strides = [1, 1]} : vector<128x32xf32> to vector<8x32xf32>
    %cst_33 = arith.constant dense<0.000000e+00> : vector<8x8xf32>
    %94 = tpu.matmul %91, %92, %cst_33 {dimension_numbers = #tpu.dot_dimension_numbers<[1], [1], [0], [0], [0, 0, 1, 0], [], []>} : vector<8x32xf32>, vector<8x32xf32>, vector<8x8xf32> -> vector<8x8xf32>
    %95 = arith.mulf %6, %94 : vector<8x8xf32>
    %cst_34 = arith.constant dense<0.000000e+00> : vector<8x32xf32>
    %96 = tpu.matmul %95, %93, %cst_34 {dimension_numbers = #tpu.dot_dimension_numbers<[1], [0], [0], [1], [0, 0, 1, 1], [], []>} : vector<8x8xf32>, vector<8x32xf32>, vector<8x32xf32> -> vector<8x32xf32>
    %97 = vector.shape_cast %96 : vector<8x32xf32> to vector<1x8x32xf32>
    %cst_35 = arith.constant dense<0.000000e+00> : vector<1xf32>
    %98 = vector.multi_reduction <add>, %97, %cst_35 [1, 2] : vector<1x8x32xf32> to vector<1xf32>
    %99 = vector.shape_cast %98 : vector<1xf32> to vector<1x1x1xf32>
    %100 = vector.extract %99[0, 0, 0] : f32 from vector<1x1x1xf32>
    %cst_36 = arith.constant 2.560000e+02 : f32
    %101 = arith.divf %100, %cst_36 : f32
    %102 = vector.broadcast %101 : f32 to vector<8x32xf32>
    %103 = arith.subf %96, %102 : vector<8x32xf32>
    %104 = arith.mulf %103, %103 : vector<8x32xf32>
    %105 = vector.shape_cast %104 : vector<8x32xf32> to vector<1x8x32xf32>
    %cst_37 = arith.constant dense<0.000000e+00> : vector<1xf32>
    %106 = vector.multi_reduction <add>, %105, %cst_37 [1, 2] : vector<1x8x32xf32> to vector<1xf32>
    %107 = vector.shape_cast %106 : vector<1xf32> to vector<1x1x1xf32>
    %108 = vector.extract %107[0, 0, 0] : f32 from vector<1x1x1xf32>
    %cst_38 = arith.constant 2.560000e+02 : f32
    %109 = arith.divf %108, %cst_38 : f32
    %110 = vector.broadcast %101 : f32 to vector<8x32xf32>
    %111 = arith.subf %96, %110 : vector<8x32xf32>
    %cst_39 = arith.constant 9.99999974E-6 : f32
    %112 = arith.addf %109, %cst_39 : f32
    %113 = math.rsqrt %112 : f32
    %114 = vector.broadcast %113 : f32 to vector<8x32xf32>
    %115 = arith.mulf %111, %114 : vector<8x32xf32>
    %c24 = arith.constant 24 : index
    %c0_40 = arith.constant 0 : index
    %116 = vector.load %arg4[%c24, %c0_40] : memref<128x32xf32, #tpu.memory_space<vmem>>, vector<8x32xf32>
    tpu.vector_store %arg4[%c24, %c0_40], %115 {strides = array<i32>} : memref<128x32xf32, #tpu.memory_space<vmem>>, vector<8x32xf32>,
    %117 = vector.extract_strided_slice %10 {offsets = [32, 0], sizes = [8, 32], strides = [1, 1]} : vector<128x32xf32> to vector<8x32xf32>
    %118 = vector.extract_strided_slice %11 {offsets = [32, 0], sizes = [8, 32], strides = [1, 1]} : vector<128x32xf32> to vector<8x32xf32>
    %119 = vector.extract_strided_slice %12 {offsets = [32, 0], sizes = [8, 32], strides = [1, 1]} : vector<128x32xf32> to vector<8x32xf32>
    %cst_41 = arith.constant dense<0.000000e+00> : vector<8x8xf32>
    %120 = tpu.matmul %117, %118, %cst_41 {dimension_numbers = #tpu.dot_dimension_numbers<[1], [1], [0], [0], [0, 0, 1, 0], [], []>} : vector<8x32xf32>, vector<8x32xf32>, vector<8x8xf32> -> vector<8x8xf32>
    %121 = arith.mulf %6, %120 : vector<8x8xf32>
    %cst_42 = arith.constant dense<0.000000e+00> : vector<8x32xf32>
    %122 = tpu.matmul %121, %119, %cst_42 {dimension_numbers = #tpu.dot_dimension_numbers<[1], [0], [0], [1], [0, 0, 1, 1], [], []>} : vector<8x8xf32>, vector<8x32xf32>, vector<8x32xf32> -> vector<8x32xf32>
    %123 = vector.shape_cast %122 : vector<8x32xf32> to vector<1x8x32xf32>
    %cst_43 = arith.constant dense<0.000000e+00> : vector<1xf32>
    %124 = vector.multi_reduction <add>, %123, %cst_43 [1, 2] : vector<1x8x32xf32> to vector<1xf32>
    %125 = vector.shape_cast %124 : vector<1xf32> to vector<1x1x1xf32>
    %126 = vector.extract %125[0, 0, 0] : f32 from vector<1x1x1xf32>
    %cst_44 = arith.constant 2.560000e+02 : f32
    %127 = arith.divf %126, %cst_44 : f32
    %128 = vector.broadcast %127 : f32 to vector<8x32xf32>
    %129 = arith.subf %122, %128 : vector<8x32xf32>
    %130 = arith.mulf %129, %129 : vector<8x32xf32>
    %131 = vector.shape_cast %130 : vector<8x32xf32> to vector<1x8x32xf32>
    %cst_45 = arith.constant dense<0.000000e+00> : vector<1xf32>
    %132 = vector.multi_reduction <add>, %131, %cst_45 [1, 2] : vector<1x8x32xf32> to vector<1xf32>
    %133 = vector.shape_cast %132 : vector<1xf32> to vector<1x1x1xf32>
    %134 = vector.extract %133[0, 0, 0] : f32 from vector<1x1x1xf32>
    %cst_46 = arith.constant 2.560000e+02 : f32
    %135 = arith.divf %134, %cst_46 : f32
    %136 = vector.broadcast %127 : f32 to vector<8x32xf32>
    %137 = arith.subf %122, %136 : vector<8x32xf32>
    %cst_47 = arith.constant 9.99999974E-6 : f32
    %138 = arith.addf %135, %cst_47 : f32
    %139 = math.rsqrt %138 : f32
    %140 = vector.broadcast %139 : f32 to vector<8x32xf32>
    %141 = arith.mulf %137, %140 : vector<8x32xf32>
    %c32_48 = arith.constant 32 : index
    %c0_49 = arith.constant 0 : index
    %142 = vector.load %arg4[%c32_48, %c0_49] : memref<128x32xf32, #tpu.memory_space<vmem>>, vector<8x32xf32>
    tpu.vector_store %arg4[%c32_48, %c0_49], %141 {strides = array<i32>} : memref<128x32xf32, #tpu.memory_space<vmem>>, vector<8x32xf32>,
    %143 = vector.extract_strided_slice %10 {offsets = [40, 0], sizes = [8, 32], strides = [1, 1]} : vector<128x32xf32> to vector<8x32xf32>
    %144 = vector.extract_strided_slice %11 {offsets = [40, 0], sizes = [8, 32], strides = [1, 1]} : vector<128x32xf32> to vector<8x32xf32>
    %145 = vector.extract_strided_slice %12 {offsets = [40, 0], sizes = [8, 32], strides = [1, 1]} : vector<128x32xf32> to vector<8x32xf32>
    %cst_50 = arith.constant dense<0.000000e+00> : vector<8x8xf32>
    %146 = tpu.matmul %143, %144, %cst_50 {dimension_numbers = #tpu.dot_dimension_numbers<[1], [1], [0], [0], [0, 0, 1, 0], [], []>} : vector<8x32xf32>, vector<8x32xf32>, vector<8x8xf32> -> vector<8x8xf32>
    %147 = arith.mulf %6, %146 : vector<8x8xf32>
    %cst_51 = arith.constant dense<0.000000e+00> : vector<8x32xf32>
    %148 = tpu.matmul %147, %145, %cst_51 {dimension_numbers = #tpu.dot_dimension_numbers<[1], [0], [0], [1], [0, 0, 1, 1], [], []>} : vector<8x8xf32>, vector<8x32xf32>, vector<8x32xf32> -> vector<8x32xf32>
    %149 = vector.shape_cast %148 : vector<8x32xf32> to vector<1x8x32xf32>
    %cst_52 = arith.constant dense<0.000000e+00> : vector<1xf32>
    %150 = vector.multi_reduction <add>, %149, %cst_52 [1, 2] : vector<1x8x32xf32> to vector<1xf32>
    %151 = vector.shape_cast %150 : vector<1xf32> to vector<1x1x1xf32>
    %152 = vector.extract %151[0, 0, 0] : f32 from vector<1x1x1xf32>
    %cst_53 = arith.constant 2.560000e+02 : f32
    %153 = arith.divf %152, %cst_53 : f32
    %154 = vector.broadcast %153 : f32 to vector<8x32xf32>
    %155 = arith.subf %148, %154 : vector<8x32xf32>
    %156 = arith.mulf %155, %155 : vector<8x32xf32>
    %157 = vector.shape_cast %156 : vector<8x32xf32> to vector<1x8x32xf32>
    %cst_54 = arith.constant dense<0.000000e+00> : vector<1xf32>
    %158 = vector.multi_reduction <add>, %157, %cst_54 [1, 2] : vector<1x8x32xf32> to vector<1xf32>
    %159 = vector.shape_cast %158 : vector<1xf32> to vector<1x1x1xf32>
    %160 = vector.extract %159[0, 0, 0] : f32 from vector<1x1x1xf32>
    %cst_55 = arith.constant 2.560000e+02 : f32
    %161 = arith.divf %160, %cst_55 : f32
    %162 = vector.broadcast %153 : f32 to vector<8x32xf32>
    %163 = arith.subf %148, %162 : vector<8x32xf32>
    %cst_56 = arith.constant 9.99999974E-6 : f32
    %164 = arith.addf %161, %cst_56 : f32
    %165 = math.rsqrt %164 : f32
    %166 = vector.broadcast %165 : f32 to vector<8x32xf32>
    %167 = arith.mulf %163, %166 : vector<8x32xf32>
    %c40 = arith.constant 40 : index
    %c0_57 = arith.constant 0 : index
    %168 = vector.load %arg4[%c40, %c0_57] : memref<128x32xf32, #tpu.memory_space<vmem>>, vector<8x32xf32>
    tpu.vector_store %arg4[%c40, %c0_57], %167 {strides = array<i32>} : memref<128x32xf32, #tpu.memory_space<vmem>>, vector<8x32xf32>,
    %169 = vector.extract_strided_slice %10 {offsets = [48, 0], sizes = [8, 32], strides = [1, 1]} : vector<128x32xf32> to vector<8x32xf32>
    %170 = vector.extract_strided_slice %11 {offsets = [48, 0], sizes = [8, 32], strides = [1, 1]} : vector<128x32xf32> to vector<8x32xf32>
    %171 = vector.extract_strided_slice %12 {offsets = [48, 0], sizes = [8, 32], strides = [1, 1]} : vector<128x32xf32> to vector<8x32xf32>
    %cst_58 = arith.constant dense<0.000000e+00> : vector<8x8xf32>
    %172 = tpu.matmul %169, %170, %cst_58 {dimension_numbers = #tpu.dot_dimension_numbers<[1], [1], [0], [0], [0, 0, 1, 0], [], []>} : vector<8x32xf32>, vector<8x32xf32>, vector<8x8xf32> -> vector<8x8xf32>
    %173 = arith.mulf %6, %172 : vector<8x8xf32>
    %cst_59 = arith.constant dense<0.000000e+00> : vector<8x32xf32>
    %174 = tpu.matmul %173, %171, %cst_59 {dimension_numbers = #tpu.dot_dimension_numbers<[1], [0], [0], [1], [0, 0, 1, 1], [], []>} : vector<8x8xf32>, vector<8x32xf32>, vector<8x32xf32> -> vector<8x32xf32>
    %175 = vector.shape_cast %174 : vector<8x32xf32> to vector<1x8x32xf32>
    %cst_60 = arith.constant dense<0.000000e+00> : vector<1xf32>
    %176 = vector.multi_reduction <add>, %175, %cst_60 [1, 2] : vector<1x8x32xf32> to vector<1xf32>
    %177 = vector.shape_cast %176 : vector<1xf32> to vector<1x1x1xf32>
    %178 = vector.extract %177[0, 0, 0] : f32 from vector<1x1x1xf32>
    %cst_61 = arith.constant 2.560000e+02 : f32
    %179 = arith.divf %178, %cst_61 : f32
    %180 = vector.broadcast %179 : f32 to vector<8x32xf32>
    %181 = arith.subf %174, %180 : vector<8x32xf32>
    %182 = arith.mulf %181, %181 : vector<8x32xf32>
    %183 = vector.shape_cast %182 : vector<8x32xf32> to vector<1x8x32xf32>
    %cst_62 = arith.constant dense<0.000000e+00> : vector<1xf32>
    %184 = vector.multi_reduction <add>, %183, %cst_62 [1, 2] : vector<1x8x32xf32> to vector<1xf32>
    %185 = vector.shape_cast %184 : vector<1xf32> to vector<1x1x1xf32>
    %186 = vector.extract %185[0, 0, 0] : f32 from vector<1x1x1xf32>
    %cst_63 = arith.constant 2.560000e+02 : f32
    %187 = arith.divf %186, %cst_63 : f32
    %188 = vector.broadcast %179 : f32 to vector<8x32xf32>
    %189 = arith.subf %174, %188 : vector<8x32xf32>
    %cst_64 = arith.constant 9.99999974E-6 : f32
    %190 = arith.addf %187, %cst_64 : f32
    %191 = math.rsqrt %190 : f32
    %192 = vector.broadcast %191 : f32 to vector<8x32xf32>
    %193 = arith.mulf %189, %192 : vector<8x32xf32>
    %c48_65 = arith.constant 48 : index
    %c0_66 = arith.constant 0 : index
    %194 = vector.load %arg4[%c48_65, %c0_66] : memref<128x32xf32, #tpu.memory_space<vmem>>, vector<8x32xf32>
    tpu.vector_store %arg4[%c48_65, %c0_66], %193 {strides = array<i32>} : memref<128x32xf32, #tpu.memory_space<vmem>>, vector<8x32xf32>,
    %195 = vector.extract_strided_slice %10 {offsets = [56, 0], sizes = [8, 32], strides = [1, 1]} : vector<128x32xf32> to vector<8x32xf32>
    %196 = vector.extract_strided_slice %11 {offsets = [56, 0], sizes = [8, 32], strides = [1, 1]} : vector<128x32xf32> to vector<8x32xf32>
    %197 = vector.extract_strided_slice %12 {offsets = [56, 0], sizes = [8, 32], strides = [1, 1]} : vector<128x32xf32> to vector<8x32xf32>
    %cst_67 = arith.constant dense<0.000000e+00> : vector<8x8xf32>
    %198 = tpu.matmul %195, %196, %cst_67 {dimension_numbers = #tpu.dot_dimension_numbers<[1], [1], [0], [0], [0, 0, 1, 0], [], []>} : vector<8x32xf32>, vector<8x32xf32>, vector<8x8xf32> -> vector<8x8xf32>
    %199 = arith.mulf %6, %198 : vector<8x8xf32>
    %cst_68 = arith.constant dense<0.000000e+00> : vector<8x32xf32>
    %200 = tpu.matmul %199, %197, %cst_68 {dimension_numbers = #tpu.dot_dimension_numbers<[1], [0], [0], [1], [0, 0, 1, 1], [], []>} : vector<8x8xf32>, vector<8x32xf32>, vector<8x32xf32> -> vector<8x32xf32>
    %201 = vector.shape_cast %200 : vector<8x32xf32> to vector<1x8x32xf32>
    %cst_69 = arith.constant dense<0.000000e+00> : vector<1xf32>
    %202 = vector.multi_reduction <add>, %201, %cst_69 [1, 2] : vector<1x8x32xf32> to vector<1xf32>
    %203 = vector.shape_cast %202 : vector<1xf32> to vector<1x1x1xf32>
    %204 = vector.extract %203[0, 0, 0] : f32 from vector<1x1x1xf32>
    %cst_70 = arith.constant 2.560000e+02 : f32
    %205 = arith.divf %204, %cst_70 : f32
    %206 = vector.broadcast %205 : f32 to vector<8x32xf32>
    %207 = arith.subf %200, %206 : vector<8x32xf32>
    %208 = arith.mulf %207, %207 : vector<8x32xf32>
    %209 = vector.shape_cast %208 : vector<8x32xf32> to vector<1x8x32xf32>
    %cst_71 = arith.constant dense<0.000000e+00> : vector<1xf32>
    %210 = vector.multi_reduction <add>, %209, %cst_71 [1, 2] : vector<1x8x32xf32> to vector<1xf32>
    %211 = vector.shape_cast %210 : vector<1xf32> to vector<1x1x1xf32>
    %212 = vector.extract %211[0, 0, 0] : f32 from vector<1x1x1xf32>
    %cst_72 = arith.constant 2.560000e+02 : f32
    %213 = arith.divf %212, %cst_72 : f32
    %214 = vector.broadcast %205 : f32 to vector<8x32xf32>
    %215 = arith.subf %200, %214 : vector<8x32xf32>
    %cst_73 = arith.constant 9.99999974E-6 : f32
    %216 = arith.addf %213, %cst_73 : f32
    %217 = math.rsqrt %216 : f32
    %218 = vector.broadcast %217 : f32 to vector<8x32xf32>
    %219 = arith.mulf %215, %218 : vector<8x32xf32>
    %c56_74 = arith.constant 56 : index
    %c0_75 = arith.constant 0 : index
    %220 = vector.load %arg4[%c56_74, %c0_75] : memref<128x32xf32, #tpu.memory_space<vmem>>, vector<8x32xf32>
    tpu.vector_store %arg4[%c56_74, %c0_75], %219 {strides = array<i32>} : memref<128x32xf32, #tpu.memory_space<vmem>>, vector<8x32xf32>,
    %221 = vector.extract_strided_slice %10 {offsets = [64, 0], sizes = [8, 32], strides = [1, 1]} : vector<128x32xf32> to vector<8x32xf32>
    %222 = vector.extract_strided_slice %11 {offsets = [64, 0], sizes = [8, 32], strides = [1, 1]} : vector<128x32xf32> to vector<8x32xf32>
    %223 = vector.extract_strided_slice %12 {offsets = [64, 0], sizes = [8, 32], strides = [1, 1]} : vector<128x32xf32> to vector<8x32xf32>
    %cst_76 = arith.constant dense<0.000000e+00> : vector<8x8xf32>
    %224 = tpu.matmul %221, %222, %cst_76 {dimension_numbers = #tpu.dot_dimension_numbers<[1], [1], [0], [0], [0, 0, 1, 0], [], []>} : vector<8x32xf32>, vector<8x32xf32>, vector<8x8xf32> -> vector<8x8xf32>
    %225 = arith.mulf %6, %224 : vector<8x8xf32>
    %cst_77 = arith.constant dense<0.000000e+00> : vector<8x32xf32>
    %226 = tpu.matmul %225, %223, %cst_77 {dimension_numbers = #tpu.dot_dimension_numbers<[1], [0], [0], [1], [0, 0, 1, 1], [], []>} : vector<8x8xf32>, vector<8x32xf32>, vector<8x32xf32> -> vector<8x32xf32>
    %227 = vector.shape_cast %226 : vector<8x32xf32> to vector<1x8x32xf32>
    %cst_78 = arith.constant dense<0.000000e+00> : vector<1xf32>
    %228 = vector.multi_reduction <add>, %227, %cst_78 [1, 2] : vector<1x8x32xf32> to vector<1xf32>
    %229 = vector.shape_cast %228 : vector<1xf32> to vector<1x1x1xf32>
    %230 = vector.extract %229[0, 0, 0] : f32 from vector<1x1x1xf32>
    %cst_79 = arith.constant 2.560000e+02 : f32
    %231 = arith.divf %230, %cst_79 : f32
    %232 = vector.broadcast %231 : f32 to vector<8x32xf32>
    %233 = arith.subf %226, %232 : vector<8x32xf32>
    %234 = arith.mulf %233, %233 : vector<8x32xf32>
    %235 = vector.shape_cast %234 : vector<8x32xf32> to vector<1x8x32xf32>
    %cst_80 = arith.constant dense<0.000000e+00> : vector<1xf32>
    %236 = vector.multi_reduction <add>, %235, %cst_80 [1, 2] : vector<1x8x32xf32> to vector<1xf32>
    %237 = vector.shape_cast %236 : vector<1xf32> to vector<1x1x1xf32>
    %238 = vector.extract %237[0, 0, 0] : f32 from vector<1x1x1xf32>
    %cst_81 = arith.constant 2.560000e+02 : f32
    %239 = arith.divf %238, %cst_81 : f32
    %240 = vector.broadcast %231 : f32 to vector<8x32xf32>
    %241 = arith.subf %226, %240 : vector<8x32xf32>
    %cst_82 = arith.constant 9.99999974E-6 : f32
    %242 = arith.addf %239, %cst_82 : f32
    %243 = math.rsqrt %242 : f32
    %244 = vector.broadcast %243 : f32 to vector<8x32xf32>
    %245 = arith.mulf %241, %244 : vector<8x32xf32>
    %c64 = arith.constant 64 : index
    %c0_83 = arith.constant 0 : index
    %246 = vector.load %arg4[%c64, %c0_83] : memref<128x32xf32, #tpu.memory_space<vmem>>, vector<8x32xf32>
    tpu.vector_store %arg4[%c64, %c0_83], %245 {strides = array<i32>} : memref<128x32xf32, #tpu.memory_space<vmem>>, vector<8x32xf32>,
    %247 = vector.extract_strided_slice %10 {offsets = [72, 0], sizes = [8, 32], strides = [1, 1]} : vector<128x32xf32> to vector<8x32xf32>
    %248 = vector.extract_strided_slice %11 {offsets = [72, 0], sizes = [8, 32], strides = [1, 1]} : vector<128x32xf32> to vector<8x32xf32>
    %249 = vector.extract_strided_slice %12 {offsets = [72, 0], sizes = [8, 32], strides = [1, 1]} : vector<128x32xf32> to vector<8x32xf32>
    %cst_84 = arith.constant dense<0.000000e+00> : vector<8x8xf32>
    %250 = tpu.matmul %247, %248, %cst_84 {dimension_numbers = #tpu.dot_dimension_numbers<[1], [1], [0], [0], [0, 0, 1, 0], [], []>} : vector<8x32xf32>, vector<8x32xf32>, vector<8x8xf32> -> vector<8x8xf32>
    %251 = arith.mulf %6, %250 : vector<8x8xf32>
    %cst_85 = arith.constant dense<0.000000e+00> : vector<8x32xf32>
    %252 = tpu.matmul %251, %249, %cst_85 {dimension_numbers = #tpu.dot_dimension_numbers<[1], [0], [0], [1], [0, 0, 1, 1], [], []>} : vector<8x8xf32>, vector<8x32xf32>, vector<8x32xf32> -> vector<8x32xf32>
    %253 = vector.shape_cast %252 : vector<8x32xf32> to vector<1x8x32xf32>
    %cst_86 = arith.constant dense<0.000000e+00> : vector<1xf32>
    %254 = vector.multi_reduction <add>, %253, %cst_86 [1, 2] : vector<1x8x32xf32> to vector<1xf32>
    %255 = vector.shape_cast %254 : vector<1xf32> to vector<1x1x1xf32>
    %256 = vector.extract %255[0, 0, 0] : f32 from vector<1x1x1xf32>
    %cst_87 = arith.constant 2.560000e+02 : f32
    %257 = arith.divf %256, %cst_87 : f32
    %258 = vector.broadcast %257 : f32 to vector<8x32xf32>
    %259 = arith.subf %252, %258 : vector<8x32xf32>
    %260 = arith.mulf %259, %259 : vector<8x32xf32>
    %261 = vector.shape_cast %260 : vector<8x32xf32> to vector<1x8x32xf32>
    %cst_88 = arith.constant dense<0.000000e+00> : vector<1xf32>
    %262 = vector.multi_reduction <add>, %261, %cst_88 [1, 2] : vector<1x8x32xf32> to vector<1xf32>
    %263 = vector.shape_cast %262 : vector<1xf32> to vector<1x1x1xf32>
    %264 = vector.extract %263[0, 0, 0] : f32 from vector<1x1x1xf32>
    %cst_89 = arith.constant 2.560000e+02 : f32
    %265 = arith.divf %264, %cst_89 : f32
    %266 = vector.broadcast %257 : f32 to vector<8x32xf32>
    %267 = arith.subf %252, %266 : vector<8x32xf32>
    %cst_90 = arith.constant 9.99999974E-6 : f32
    %268 = arith.addf %265, %cst_90 : f32
    %269 = math.rsqrt %268 : f32
    %270 = vector.broadcast %269 : f32 to vector<8x32xf32>
    %271 = arith.mulf %267, %270 : vector<8x32xf32>
    %c72_91 = arith.constant 72 : index
    %c0_92 = arith.constant 0 : index
    %272 = vector.load %arg4[%c72_91, %c0_92] : memref<128x32xf32, #tpu.memory_space<vmem>>, vector<8x32xf32>
    tpu.vector_store %arg4[%c72_91, %c0_92], %271 {strides = array<i32>} : memref<128x32xf32, #tpu.memory_space<vmem>>, vector<8x32xf32>,
    %273 = vector.extract_strided_slice %10 {offsets = [80, 0], sizes = [8, 32], strides = [1, 1]} : vector<128x32xf32> to vector<8x32xf32>
    %274 = vector.extract_strided_slice %11 {offsets = [80, 0], sizes = [8, 32], strides = [1, 1]} : vector<128x32xf32> to vector<8x32xf32>
    %275 = vector.extract_strided_slice %12 {offsets = [80, 0], sizes = [8, 32], strides = [1, 1]} : vector<128x32xf32> to vector<8x32xf32>
    %cst_93 = arith.constant dense<0.000000e+00> : vector<8x8xf32>
    %276 = tpu.matmul %273, %274, %cst_93 {dimension_numbers = #tpu.dot_dimension_numbers<[1], [1], [0], [0], [0, 0, 1, 0], [], []>} : vector<8x32xf32>, vector<8x32xf32>, vector<8x8xf32> -> vector<8x8xf32>
    %277 = arith.mulf %6, %276 : vector<8x8xf32>
    %cst_94 = arith.constant dense<0.000000e+00> : vector<8x32xf32>
    %278 = tpu.matmul %277, %275, %cst_94 {dimension_numbers = #tpu.dot_dimension_numbers<[1], [0], [0], [1], [0, 0, 1, 1], [], []>} : vector<8x8xf32>, vector<8x32xf32>, vector<8x32xf32> -> vector<8x32xf32>
    %279 = vector.shape_cast %278 : vector<8x32xf32> to vector<1x8x32xf32>
    %cst_95 = arith.constant dense<0.000000e+00> : vector<1xf32>
    %280 = vector.multi_reduction <add>, %279, %cst_95 [1, 2] : vector<1x8x32xf32> to vector<1xf32>
    %281 = vector.shape_cast %280 : vector<1xf32> to vector<1x1x1xf32>
    %282 = vector.extract %281[0, 0, 0] : f32 from vector<1x1x1xf32>
    %cst_96 = arith.constant 2.560000e+02 : f32
    %283 = arith.divf %282, %cst_96 : f32
    %284 = vector.broadcast %283 : f32 to vector<8x32xf32>
    %285 = arith.subf %278, %284 : vector<8x32xf32>
    %286 = arith.mulf %285, %285 : vector<8x32xf32>
    %287 = vector.shape_cast %286 : vector<8x32xf32> to vector<1x8x32xf32>
    %cst_97 = arith.constant dense<0.000000e+00> : vector<1xf32>
    %288 = vector.multi_reduction <add>, %287, %cst_97 [1, 2] : vector<1x8x32xf32> to vector<1xf32>
    %289 = vector.shape_cast %288 : vector<1xf32> to vector<1x1x1xf32>
    %290 = vector.extract %289[0, 0, 0] : f32 from vector<1x1x1xf32>
    %cst_98 = arith.constant 2.560000e+02 : f32
    %291 = arith.divf %290, %cst_98 : f32
    %292 = vector.broadcast %283 : f32 to vector<8x32xf32>
    %293 = arith.subf %278, %292 : vector<8x32xf32>
    %cst_99 = arith.constant 9.99999974E-6 : f32
    %294 = arith.addf %291, %cst_99 : f32
    %295 = math.rsqrt %294 : f32
    %296 = vector.broadcast %295 : f32 to vector<8x32xf32>
    %297 = arith.mulf %293, %296 : vector<8x32xf32>
    %c80_100 = arith.constant 80 : index
    %c0_101 = arith.constant 0 : index
    %298 = vector.load %arg4[%c80_100, %c0_101] : memref<128x32xf32, #tpu.memory_space<vmem>>, vector<8x32xf32>
    tpu.vector_store %arg4[%c80_100, %c0_101], %297 {strides = array<i32>} : memref<128x32xf32, #tpu.memory_space<vmem>>, vector<8x32xf32>,
    %299 = vector.extract_strided_slice %10 {offsets = [88, 0], sizes = [8, 32], strides = [1, 1]} : vector<128x32xf32> to vector<8x32xf32>
    %300 = vector.extract_strided_slice %11 {offsets = [88, 0], sizes = [8, 32], strides = [1, 1]} : vector<128x32xf32> to vector<8x32xf32>
    %301 = vector.extract_strided_slice %12 {offsets = [88, 0], sizes = [8, 32], strides = [1, 1]} : vector<128x32xf32> to vector<8x32xf32>
    %cst_102 = arith.constant dense<0.000000e+00> : vector<8x8xf32>
    %302 = tpu.matmul %299, %300, %cst_102 {dimension_numbers = #tpu.dot_dimension_numbers<[1], [1], [0], [0], [0, 0, 1, 0], [], []>} : vector<8x32xf32>, vector<8x32xf32>, vector<8x8xf32> -> vector<8x8xf32>
    %303 = arith.mulf %6, %302 : vector<8x8xf32>
    %cst_103 = arith.constant dense<0.000000e+00> : vector<8x32xf32>
    %304 = tpu.matmul %303, %301, %cst_103 {dimension_numbers = #tpu.dot_dimension_numbers<[1], [0], [0], [1], [0, 0, 1, 1], [], []>} : vector<8x8xf32>, vector<8x32xf32>, vector<8x32xf32> -> vector<8x32xf32>
    %305 = vector.shape_cast %304 : vector<8x32xf32> to vector<1x8x32xf32>
    %cst_104 = arith.constant dense<0.000000e+00> : vector<1xf32>
    %306 = vector.multi_reduction <add>, %305, %cst_104 [1, 2] : vector<1x8x32xf32> to vector<1xf32>
    %307 = vector.shape_cast %306 : vector<1xf32> to vector<1x1x1xf32>
    %308 = vector.extract %307[0, 0, 0] : f32 from vector<1x1x1xf32>
    %cst_105 = arith.constant 2.560000e+02 : f32
    %309 = arith.divf %308, %cst_105 : f32
    %310 = vector.broadcast %309 : f32 to vector<8x32xf32>
    %311 = arith.subf %304, %310 : vector<8x32xf32>
    %312 = arith.mulf %311, %311 : vector<8x32xf32>
    %313 = vector.shape_cast %312 : vector<8x32xf32> to vector<1x8x32xf32>
    %cst_106 = arith.constant dense<0.000000e+00> : vector<1xf32>
    %314 = vector.multi_reduction <add>, %313, %cst_106 [1, 2] : vector<1x8x32xf32> to vector<1xf32>
    %315 = vector.shape_cast %314 : vector<1xf32> to vector<1x1x1xf32>
    %316 = vector.extract %315[0, 0, 0] : f32 from vector<1x1x1xf32>
    %cst_107 = arith.constant 2.560000e+02 : f32
    %317 = arith.divf %316, %cst_107 : f32
    %318 = vector.broadcast %309 : f32 to vector<8x32xf32>
    %319 = arith.subf %304, %318 : vector<8x32xf32>
    %cst_108 = arith.constant 9.99999974E-6 : f32
    %320 = arith.addf %317, %cst_108 : f32
    %321 = math.rsqrt %320 : f32
    %322 = vector.broadcast %321 : f32 to vector<8x32xf32>
    %323 = arith.mulf %319, %322 : vector<8x32xf32>
    %c88 = arith.constant 88 : index
    %c0_109 = arith.constant 0 : index
    %324 = vector.load %arg4[%c88, %c0_109] : memref<128x32xf32, #tpu.memory_space<vmem>>, vector<8x32xf32>
    tpu.vector_store %arg4[%c88, %c0_109], %323 {strides = array<i32>} : memref<128x32xf32, #tpu.memory_space<vmem>>, vector<8x32xf32>,
    %325 = vector.extract_strided_slice %10 {offsets = [96, 0], sizes = [8, 32], strides = [1, 1]} : vector<128x32xf32> to vector<8x32xf32>
    %326 = vector.extract_strided_slice %11 {offsets = [96, 0], sizes = [8, 32], strides = [1, 1]} : vector<128x32xf32> to vector<8x32xf32>
    %327 = vector.extract_strided_slice %12 {offsets = [96, 0], sizes = [8, 32], strides = [1, 1]} : vector<128x32xf32> to vector<8x32xf32>
    %cst_110 = arith.constant dense<0.000000e+00> : vector<8x8xf32>
    %328 = tpu.matmul %325, %326, %cst_110 {dimension_numbers = #tpu.dot_dimension_numbers<[1], [1], [0], [0], [0, 0, 1, 0], [], []>} : vector<8x32xf32>, vector<8x32xf32>, vector<8x8xf32> -> vector<8x8xf32>
    %329 = arith.mulf %6, %328 : vector<8x8xf32>
    %cst_111 = arith.constant dense<0.000000e+00> : vector<8x32xf32>
    %330 = tpu.matmul %329, %327, %cst_111 {dimension_numbers = #tpu.dot_dimension_numbers<[1], [0], [0], [1], [0, 0, 1, 1], [], []>} : vector<8x8xf32>, vector<8x32xf32>, vector<8x32xf32> -> vector<8x32xf32>
    %331 = vector.shape_cast %330 : vector<8x32xf32> to vector<1x8x32xf32>
    %cst_112 = arith.constant dense<0.000000e+00> : vector<1xf32>
    %332 = vector.multi_reduction <add>, %331, %cst_112 [1, 2] : vector<1x8x32xf32> to vector<1xf32>
    %333 = vector.shape_cast %332 : vector<1xf32> to vector<1x1x1xf32>
    %334 = vector.extract %333[0, 0, 0] : f32 from vector<1x1x1xf32>
    %cst_113 = arith.constant 2.560000e+02 : f32
    %335 = arith.divf %334, %cst_113 : f32
    %336 = vector.broadcast %335 : f32 to vector<8x32xf32>
    %337 = arith.subf %330, %336 : vector<8x32xf32>
    %338 = arith.mulf %337, %337 : vector<8x32xf32>
    %339 = vector.shape_cast %338 : vector<8x32xf32> to vector<1x8x32xf32>
    %cst_114 = arith.constant dense<0.000000e+00> : vector<1xf32>
    %340 = vector.multi_reduction <add>, %339, %cst_114 [1, 2] : vector<1x8x32xf32> to vector<1xf32>
    %341 = vector.shape_cast %340 : vector<1xf32> to vector<1x1x1xf32>
    %342 = vector.extract %341[0, 0, 0] : f32 from vector<1x1x1xf32>
    %cst_115 = arith.constant 2.560000e+02 : f32
    %343 = arith.divf %342, %cst_115 : f32
    %344 = vector.broadcast %335 : f32 to vector<8x32xf32>
    %345 = arith.subf %330, %344 : vector<8x32xf32>
    %cst_116 = arith.constant 9.99999974E-6 : f32
    %346 = arith.addf %343, %cst_116 : f32
    %347 = math.rsqrt %346 : f32
    %348 = vector.broadcast %347 : f32 to vector<8x32xf32>
    %349 = arith.mulf %345, %348 : vector<8x32xf32>
    %c96 = arith.constant 96 : index
    %c0_117 = arith.constant 0 : index
    %350 = vector.load %arg4[%c96, %c0_117] : memref<128x32xf32, #tpu.memory_space<vmem>>, vector<8x32xf32>
    tpu.vector_store %arg4[%c96, %c0_117], %349 {strides = array<i32>} : memref<128x32xf32, #tpu.memory_space<vmem>>, vector<8x32xf32>,
    %351 = vector.extract_strided_slice %10 {offsets = [104, 0], sizes = [8, 32], strides = [1, 1]} : vector<128x32xf32> to vector<8x32xf32>
    %352 = vector.extract_strided_slice %11 {offsets = [104, 0], sizes = [8, 32], strides = [1, 1]} : vector<128x32xf32> to vector<8x32xf32>
    %353 = vector.extract_strided_slice %12 {offsets = [104, 0], sizes = [8, 32], strides = [1, 1]} : vector<128x32xf32> to vector<8x32xf32>
    %cst_118 = arith.constant dense<0.000000e+00> : vector<8x8xf32>
    %354 = tpu.matmul %351, %352, %cst_118 {dimension_numbers = #tpu.dot_dimension_numbers<[1], [1], [0], [0], [0, 0, 1, 0], [], []>} : vector<8x32xf32>, vector<8x32xf32>, vector<8x8xf32> -> vector<8x8xf32>
    %355 = arith.mulf %6, %354 : vector<8x8xf32>
    %cst_119 = arith.constant dense<0.000000e+00> : vector<8x32xf32>
    %356 = tpu.matmul %355, %353, %cst_119 {dimension_numbers = #tpu.dot_dimension_numbers<[1], [0], [0], [1], [0, 0, 1, 1], [], []>} : vector<8x8xf32>, vector<8x32xf32>, vector<8x32xf32> -> vector<8x32xf32>
    %357 = vector.shape_cast %356 : vector<8x32xf32> to vector<1x8x32xf32>
    %cst_120 = arith.constant dense<0.000000e+00> : vector<1xf32>
    %358 = vector.multi_reduction <add>, %357, %cst_120 [1, 2] : vector<1x8x32xf32> to vector<1xf32>
    %359 = vector.shape_cast %358 : vector<1xf32> to vector<1x1x1xf32>
    %360 = vector.extract %359[0, 0, 0] : f32 from vector<1x1x1xf32>
    %cst_121 = arith.constant 2.560000e+02 : f32
    %361 = arith.divf %360, %cst_121 : f32
    %362 = vector.broadcast %361 : f32 to vector<8x32xf32>
    %363 = arith.subf %356, %362 : vector<8x32xf32>
    %364 = arith.mulf %363, %363 : vector<8x32xf32>
    %365 = vector.shape_cast %364 : vector<8x32xf32> to vector<1x8x32xf32>
    %cst_122 = arith.constant dense<0.000000e+00> : vector<1xf32>
    %366 = vector.multi_reduction <add>, %365, %cst_122 [1, 2] : vector<1x8x32xf32> to vector<1xf32>
    %367 = vector.shape_cast %366 : vector<1xf32> to vector<1x1x1xf32>
    %368 = vector.extract %367[0, 0, 0] : f32 from vector<1x1x1xf32>
    %cst_123 = arith.constant 2.560000e+02 : f32
    %369 = arith.divf %368, %cst_123 : f32
    %370 = vector.broadcast %361 : f32 to vector<8x32xf32>
    %371 = arith.subf %356, %370 : vector<8x32xf32>
    %cst_124 = arith.constant 9.99999974E-6 : f32
    %372 = arith.addf %369, %cst_124 : f32
    %373 = math.rsqrt %372 : f32
    %374 = vector.broadcast %373 : f32 to vector<8x32xf32>
    %375 = arith.mulf %371, %374 : vector<8x32xf32>
    %c104 = arith.constant 104 : index
    %c0_125 = arith.constant 0 : index
    %376 = vector.load %arg4[%c104, %c0_125] : memref<128x32xf32, #tpu.memory_space<vmem>>, vector<8x32xf32>
    tpu.vector_store %arg4[%c104, %c0_125], %375 {strides = array<i32>} : memref<128x32xf32, #tpu.memory_space<vmem>>, vector<8x32xf32>,
    %377 = vector.extract_strided_slice %10 {offsets = [112, 0], sizes = [8, 32], strides = [1, 1]} : vector<128x32xf32> to vector<8x32xf32>
    %378 = vector.extract_strided_slice %11 {offsets = [112, 0], sizes = [8, 32], strides = [1, 1]} : vector<128x32xf32> to vector<8x32xf32>
    %379 = vector.extract_strided_slice %12 {offsets = [112, 0], sizes = [8, 32], strides = [1, 1]} : vector<128x32xf32> to vector<8x32xf32>
    %cst_126 = arith.constant dense<0.000000e+00> : vector<8x8xf32>
    %380 = tpu.matmul %377, %378, %cst_126 {dimension_numbers = #tpu.dot_dimension_numbers<[1], [1], [0], [0], [0, 0, 1, 0], [], []>} : vector<8x32xf32>, vector<8x32xf32>, vector<8x8xf32> -> vector<8x8xf32>
    %381 = arith.mulf %6, %380 : vector<8x8xf32>
    %cst_127 = arith.constant dense<0.000000e+00> : vector<8x32xf32>
    %382 = tpu.matmul %381, %379, %cst_127 {dimension_numbers = #tpu.dot_dimension_numbers<[1], [0], [0], [1], [0, 0, 1, 1], [], []>} : vector<8x8xf32>, vector<8x32xf32>, vector<8x32xf32> -> vector<8x32xf32>
    %383 = vector.shape_cast %382 : vector<8x32xf32> to vector<1x8x32xf32>
    %cst_128 = arith.constant dense<0.000000e+00> : vector<1xf32>
    %384 = vector.multi_reduction <add>, %383, %cst_128 [1, 2] : vector<1x8x32xf32> to vector<1xf32>
    %385 = vector.shape_cast %384 : vector<1xf32> to vector<1x1x1xf32>
    %386 = vector.extract %385[0, 0, 0] : f32 from vector<1x1x1xf32>
    %cst_129 = arith.constant 2.560000e+02 : f32
    %387 = arith.divf %386, %cst_129 : f32
    %388 = vector.broadcast %387 : f32 to vector<8x32xf32>
    %389 = arith.subf %382, %388 : vector<8x32xf32>
    %390 = arith.mulf %389, %389 : vector<8x32xf32>
    %391 = vector.shape_cast %390 : vector<8x32xf32> to vector<1x8x32xf32>
    %cst_130 = arith.constant dense<0.000000e+00> : vector<1xf32>
    %392 = vector.multi_reduction <add>, %391, %cst_130 [1, 2] : vector<1x8x32xf32> to vector<1xf32>
    %393 = vector.shape_cast %392 : vector<1xf32> to vector<1x1x1xf32>
    %394 = vector.extract %393[0, 0, 0] : f32 from vector<1x1x1xf32>
    %cst_131 = arith.constant 2.560000e+02 : f32
    %395 = arith.divf %394, %cst_131 : f32
    %396 = vector.broadcast %387 : f32 to vector<8x32xf32>
    %397 = arith.subf %382, %396 : vector<8x32xf32>
    %cst_132 = arith.constant 9.99999974E-6 : f32
    %398 = arith.addf %395, %cst_132 : f32
    %399 = math.rsqrt %398 : f32
    %400 = vector.broadcast %399 : f32 to vector<8x32xf32>
    %401 = arith.mulf %397, %400 : vector<8x32xf32>
    %c112 = arith.constant 112 : index
    %c0_133 = arith.constant 0 : index
    %402 = vector.load %arg4[%c112, %c0_133] : memref<128x32xf32, #tpu.memory_space<vmem>>, vector<8x32xf32>
    tpu.vector_store %arg4[%c112, %c0_133], %401 {strides = array<i32>} : memref<128x32xf32, #tpu.memory_space<vmem>>, vector<8x32xf32>,
    %403 = vector.extract_strided_slice %10 {offsets = [120, 0], sizes = [8, 32], strides = [1, 1]} : vector<128x32xf32> to vector<8x32xf32>
    %404 = vector.extract_strided_slice %11 {offsets = [120, 0], sizes = [8, 32], strides = [1, 1]} : vector<128x32xf32> to vector<8x32xf32>
    %405 = vector.extract_strided_slice %12 {offsets = [120, 0], sizes = [8, 32], strides = [1, 1]} : vector<128x32xf32> to vector<8x32xf32>
    %cst_134 = arith.constant dense<0.000000e+00> : vector<8x8xf32>
    %406 = tpu.matmul %403, %404, %cst_134 {dimension_numbers = #tpu.dot_dimension_numbers<[1], [1], [0], [0], [0, 0, 1, 0], [], []>} : vector<8x32xf32>, vector<8x32xf32>, vector<8x8xf32> -> vector<8x8xf32>
    %407 = arith.mulf %6, %406 : vector<8x8xf32>
    %cst_135 = arith.constant dense<0.000000e+00> : vector<8x32xf32>
    %408 = tpu.matmul %407, %405, %cst_135 {dimension_numbers = #tpu.dot_dimension_numbers<[1], [0], [0], [1], [0, 0, 1, 1], [], []>} : vector<8x8xf32>, vector<8x32xf32>, vector<8x32xf32> -> vector<8x32xf32>
    %409 = vector.shape_cast %408 : vector<8x32xf32> to vector<1x8x32xf32>
    %cst_136 = arith.constant dense<0.000000e+00> : vector<1xf32>
    %410 = vector.multi_reduction <add>, %409, %cst_136 [1, 2] : vector<1x8x32xf32> to vector<1xf32>
    %411 = vector.shape_cast %410 : vector<1xf32> to vector<1x1x1xf32>
    %412 = vector.extract %411[0, 0, 0] : f32 from vector<1x1x1xf32>
    %cst_137 = arith.constant 2.560000e+02 : f32
    %413 = arith.divf %412, %cst_137 : f32
    %414 = vector.broadcast %413 : f32 to vector<8x32xf32>
    %415 = arith.subf %408, %414 : vector<8x32xf32>
    %416 = arith.mulf %415, %415 : vector<8x32xf32>
    %417 = vector.shape_cast %416 : vector<8x32xf32> to vector<1x8x32xf32>
    %cst_138 = arith.constant dense<0.000000e+00> : vector<1xf32>
    %418 = vector.multi_reduction <add>, %417, %cst_138 [1, 2] : vector<1x8x32xf32> to vector<1xf32>
    %419 = vector.shape_cast %418 : vector<1xf32> to vector<1x1x1xf32>
    %420 = vector.extract %419[0, 0, 0] : f32 from vector<1x1x1xf32>
    %cst_139 = arith.constant 2.560000e+02 : f32
    %421 = arith.divf %420, %cst_139 : f32
    %422 = vector.broadcast %413 : f32 to vector<8x32xf32>
    %423 = arith.subf %408, %422 : vector<8x32xf32>
    %cst_140 = arith.constant 9.99999974E-6 : f32
    %424 = arith.addf %421, %cst_140 : f32
    %425 = math.rsqrt %424 : f32
    %426 = vector.broadcast %425 : f32 to vector<8x32xf32>
    %427 = arith.mulf %423, %426 : vector<8x32xf32>
    %c120 = arith.constant 120 : index
    %c0_141 = arith.constant 0 : index
    %428 = vector.load %arg4[%c120, %c0_141] : memref<128x32xf32, #tpu.memory_space<vmem>>, vector<8x32xf32>
    tpu.vector_store %arg4[%c120, %c0_141], %427 {strides = array<i32>} : memref<128x32xf32, #tpu.memory_space<vmem>>, vector<8x32xf32>,
    %c0_142 = arith.constant 0 : index
    %c0_143 = arith.constant 0 : index
    %429 = vector.load %arg4[%c0_142, %c0_143] : memref<128x32xf32, #tpu.memory_space<vmem>>, vector<128x32xf32>
    %cst_144 = arith.constant dense<0.000000e+00> : vector<16x128xf32>
    %430 = tpu.matmul %2, %429, %cst_144 {dimension_numbers = #tpu.dot_dimension_numbers<[1], [1], [0], [0], [0, 0, 1, 0], [], []>} : vector<16x32xf32>, vector<128x32xf32>, vector<16x128xf32> -> vector<16x128xf32>
    %431 = vector.broadcast %4 : vector<16x1xf32> to vector<16x128xf32>
    %432 = arith.addf %430, %431 : vector<16x128xf32>
    %cst_145 = arith.constant 0.000000e+00 : f32
    %433 = vector.broadcast %cst_145 : f32 to vector<16x128xf32>
    %434 = arith.cmpf oge, %432, %433 : vector<16x128xf32>
    %435 = vector.broadcast %5 : vector<1x1xf32> to vector<16x128xf32>
    %436 = arith.mulf %435, %432 : vector<16x128xf32>
    %437 = arith.select %434, %432, %436 : vector<16x128xi1>, vector<16x128xf32>
    %c0_146 = arith.constant 0 : index
    %c0_147 = arith.constant 0 : index
    %438 = vector.load %arg3[%c0_146, %c0_147] : memref<16x128xf32, #tpu.memory_space<vmem>>, vector<16x128xf32>
    tpu.vector_store %arg3[%c0_146, %c0_147], %437 {strides = array<i32>} : memref<16x128xf32, #tpu.memory_space<vmem>>, vector<16x128xf32>,
    return
  }
  func.func @transform_0(%arg0: i32) -> (i32, i32) {
    %c0_i32 = arith.constant 0 : i32
    %c0_i32_0 = arith.constant 0 : i32
    return %arg0, %c0_i32 : i32, i32
  }
  func.func @transform_1(%arg0: i32) -> (i32, i32) {
    %c0_i32 = arith.constant 0 : i32
    %c0_i32_0 = arith.constant 0 : i32
    %c0_i32_1 = arith.constant 0 : i32
    return %c0_i32, %c0_i32_0 : i32, i32
  }
  func.func @transform_2(%arg0: i32) -> (i32, i32) {
    %c0_i32 = arith.constant 0 : i32
    %c0_i32_0 = arith.constant 0 : i32
    return %c0_i32, %arg0 : i32, i32
  }
}

</mosaic_0001>

<bundles_post_ra>
// kernel: _paret_forward.1
= control target key start
LH: loop header
LB: loop body
LE: loop exit
PB: predicated region body
PF: predicated region fallthrough
CT: control target
= control target key end

     0   :  { %s4355_s9 = smov 0   ;;  %s4357_s10 = smov 0   ;;  %s4904_s0 = inlined_call_operand.vmem [shape: f32[512,32], index: 0, kind: input, shape index: {}]   ;;  %s4905_s1 = inlined_call_operand.vmem [shape: f32[88,128], index: 1, kind: input, shape index: {}]   ;;  %s4906_s2 = inlined_call_operand.vmem [shape: f32[16,512], index: 2, kind: output, shape index: {}]  }
   0x1   :  { %s4359_s11 = smov 0  }
   0x2 LB: > { %s4368_s12 = sadd.s32 4294967295, %s4333_s11   ;;  %s4370_s13 = sadd.s32 1, %s4333_s11   ;;  %s4333_s11 = sphi %s4359_s11, %s4912_s11   ;;  %s4329_s10 = sphi %s4357_s10, %s4911_s10   ;;  %s4325_s9 = sphi %s4355_s9, %s4910_s9  }
   0x3   : > { %s63_s14 = ssub.s32 %s4333_s11, %s4370_s13  ;;  %s66_s15 = sadd.s32 1, %s4329_s10 }
   0x4   : > { %p64_p0 = scmp.eq.s32.totalorder %s63_s14, 0  ;;  %p76_p1 = scmp.ne.s32.totalorder %s4329_s10, %s4325_s9 }
   0x5   : > { %p77_p2 = scmp.eq.s32.totalorder %s4368_s12, 3  ;;  %p3672_p3 = scmp.ge.s32.totalorder %s4333_s11, 1 }
   0x6   : > { %s4378_s16 = scalar_select %p64_p0, %s4329_s10, %s66_s15  }
   0x7   : > { %p4380_p4 = por %p77_p2, %p76_p1  ;;  %p113_p5 = scmp.lt.s32.totalorder %s4333_s11, 5 }
   0x9   : > { %p114_p6 = pnand %p3672_p3, %p113_p5 }
   0xa   : > { %v156_v0 = vld [vmem:[%s4905_s1] sm:$0xff] (!%p114_p6)  ;;  %v157_v1 = vld [vmem:[%s4905_s1 + $0x8] sm:$0xff] (!%p114_p6)  ;;  %v158_v2 = vld [vmem:[%s4905_s1 + $0x10] sm:$0xff] (!%p114_p6)  ;;  %s3674_s24 = sshll.u32 (!%p114_p6), %s4368_s12, 4  ;;  %vm171_vm0 = vcmask (!%p114_p6), 261120   ;;  %v4335_v22 = vmov (!%p114_p6), 0.0  }
   0xb   : > { %117 = sbr.rel (%p114_p6) target bundleno = 5726 (0x165e), region = 28  ;;  %v4092_v3 = vpack.c.bf16 (!%p114_p6), %v157_v1, %v156_v0  ;;  %v159_v4 = vld [vmem:[%s4905_s1 + $0x18] sm:$0xff] (!%p114_p6)  ;;  %p135_p7 = scmp.lt.s32.totalorder (!%p114_p6), %s3674_s24, 63  ;;  %3932 = vmatprep.subr.mxu1 (!%p114_p6), %v4335_v22  ;;  %vm4336_vm1 = vmmov (!%p114_p6), 0   ;;  %v4443_v23 = vld [vmem:[%s4905_s1 + $0x30] ss:$0 sm:$0xff] (!%p114_p6)  ;;  %vm4807_vm3 = vmpackc.low (!%p114_p6), %vm171_vm0, %vm171_vm0 }
   0xc   : > { %v4096_v5 = vpack.c.bf16 (!%p114_p6), %v159_v4, %v158_v2  ;;  %3934 = vmatprep.mubr.msk.f32.mxu1 (!%p114_p6), %vm4336_vm1, %v4335_v22  ;;  %s4337_s5 = smov (!%p114_p6), 96   ;;  %s4338_s6 = smov (!%p114_p6), 64   ;;  %v4492_v46 = vld [vmem:[%s4905_s1 + $0x50] sm:$0xff] (!%p114_p6)  ;;  %vm446_vm2 = vcmask (!%p114_p6), 64512  }
   0xd   : > { %4093 = vmatprep.subr.bf16.mxu0 (!%p114_p6), %v4092_v3 }
   0xe   : > { %4095 = vmatpush3.bf16.msra.mxu0 (!%p114_p6), %v4092_v3 }
   0xf   : > { %4097 = vmatprep.subr.bf16.mxu0 (!%p114_p6), %v4096_v5 }
  0x12   : > { %s4914_s24 = smov (!%p135_p7, %s3674_s24), 63  ;;  %4099 = vmatpush3.bf16.msra.mxu0 %v4096_v5 }
  0x13   : > { %s3675_s27 = sshll.u32 %s4914_s24, 3  ;;  %3897 = vmatprep.subr.mxu0 %v4335_v22 }
  0x14   : > { %s4400_s30 = scalar_lea.vmem %s4904_s0, %s3675_s27 }
  0x15   : > { %v140_v6 = vld [vmem:[%s4400_s30] sm:$0xff]  ;;  %v141_v7 = vld [vmem:[%s4400_s30 + $0x8] sm:$0xff]  ;;  %v142_v8 = vld [vmem:[%s4400_s30 + $0x10] sm:$0xff] }
  0x16   : > { %3873 = vmatprep.mubr.msk.f32.mxu0 %vm171_vm0, %v140_v6  ;;  %v143_v9 = vld [vmem:[%s4400_s30 + $0x18] sm:$0xff]  ;;  %v144_v10 = vld [vmem:[%s4400_s30 + $0x20] sm:$0xff]  ;;  %v145_v11 = vld [vmem:[%s4400_s30 + $0x28] sm:$0xff] }
  0x17   : > { %3874 = vmatmul.mubr.msk.f32.vlgmr.msra.gmra.mrb[0].mxu0 %vm171_vm0, %v141_v7  ;;  %v146_v12 = vld [vmem:[%s4400_s30 + $0x30] sm:$0xff]  ;;  %v147_v13 = vld [vmem:[%s4400_s30 + $0x38] sm:$0xff]  ;;  %v148_v14 = vld [vmem:[%s4400_s30 + $0x40] sm:$0xff] }
  0x18   : > { %3876 = vmatprep.mubr.msk.f32.mxu0 %vm171_vm0, %v142_v8  ;;  %v149_v15 = vld [vmem:[%s4400_s30 + $0x48] sm:$0xff]  ;;  %v150_v16 = vld [vmem:[%s4400_s30 + $0x50] sm:$0xff]  ;;  %v151_v17 = vld [vmem:[%s4400_s30 + $0x58] sm:$0xff] }
  0x19   : > { %v152_v18 = vld [vmem:[%s4400_s30 + $0x60] sm:$0xff]  ;;  %v153_v19 = vld [vmem:[%s4400_s30 + $0x68] sm:$0xff]  ;;  %v154_v20 = vld [vmem:[%s4400_s30 + $0x70] sm:$0xff] }
  0x1a   : > { %v155_v21 = vld [vmem:[%s4400_s30 + $0x78] sm:$0xff] }
  0x1b   : > { %3877 = vmatmul.mubr.msk.f32.gmra.mrb[2].mxu0 %vm171_vm0, %v143_v9 }
  0x1c   : > { %3879 = vmatprep.mubr.msk.f32.mxu0 %vm171_vm0, %v144_v10 }
  0x1f   : > { %3880 = vmatmul.mubr.msk.f32.gmra.mrb[4].mxu0 %vm171_vm0, %v145_v11 }
  0x20   : > { %3882 = vmatprep.mubr.msk.f32.mxu0 %vm171_vm0, %v146_v12 }
  0x23   : > { %3883 = vmatmul.mubr.msk.f32.gmra.mrb[6].mxu0 %vm171_vm0, %v147_v13 }
  0x24   : > { %3885 = vmatprep.mubr.msk.f32.mxu0 %vm171_vm0, %v148_v14 }
  0x27   : > { %3886 = vmatmul.mubr.msk.f32.gmra.mrb[8].mxu0 %vm171_vm0, %v149_v15 }
  0x28   : > { %3888 = vmatprep.mubr.msk.f32.mxu0 %vm171_vm0, %v150_v16 }
  0x2b   : > { %3889 = vmatmul.mubr.msk.f32.gmra.mrb[10].mxu0 %vm171_vm0, %v151_v17 }
  0x2c   : > { %3891 = vmatprep.mubr.msk.f32.mxu0 %vm171_vm0, %v152_v18 }
  0x2f   : > { %3892 = vmatmul.mubr.msk.f32.gmra.mrb[12].mxu0 %vm171_vm0, %v153_v19 }
  0x30   : > { %3894 = vmatprep.mubr.msk.f32.mxu0 %vm171_vm0, %v154_v20 }
  0x33   : > { %3895 = vmatmul.mubr.msk.f32.gmra.mrb[14].mxu0 %vm171_vm0, %v155_v21 }
  0x34   : > { %3899 = vmatprep.mubr.msk.f32.mxu0 %vm4336_vm1, %v4335_v22 }
  0xea   : > { %v3875_v24 = vpop.f32.mrb[0].mxu0 }
  0xeb   : > { %v292_v25 = vadd.f32 %v3875_v24, %v4443_v23  ;;  %v286_v26 = vpop.f32.mrb[1].mxu0 }
  0xec   : > { %v287_v27 = vadd.f32 %v4443_v23, %v286_v26 }
  0xed   : > { %557 = vrot.lane.b32.xlu1 %v292_v25, %s4337_s5 }
  0xee   : > { %366 = vrot.lane.b32.xlu0 %v287_v27, %s4337_s5  ;;  %v3878_v28 = vpop.f32.mrb[2].mxu0 }
  0xef   : > { %v296_v29 = vpop.f32.mrb[3].mxu0  ;;  %v4458_v33 = vadd.f32 %v3878_v28, %v4443_v23 }
  0xf0   : > { %v297_v30 = vadd.f32 %v4443_v23, %v296_v29 }
  0xf1   : > { %634 = vrot.lane.b32.xlu1 %v292_v25, %s4338_s6 }
  0xf2   : > { %443 = vrot.lane.b32.xlu0 %v287_v27, %s4338_s6  ;;  %v4452_v31 = vpop.f32.mrb[4].mxu0 }
  0xf3   : > { %v4455_v32 = vpop.f32.mrb[5].mxu0 }
  0xf4   : > { %v4536_v14 = vadd.f32 %v4443_v23, %v4455_v32 }
  0xf6   : > { %747 = vrot.lane.b32.xlu0 %v297_v30, %s4337_s5  ;;  %v4460_v34 = vpop.f32.mrb[6].mxu0 }
  0xf7   : > { %v4463_v35 = vpop.f32.mrb[7].mxu0 }
  0xfa   : > { %824 = vrot.lane.b32.xlu0 %v297_v30, %s4338_s6  ;;  %v4465_v36 = vpop.f32.mrb[8].mxu0 }
  0xfb   : > { %v4469_v37 = vpop.f32.mrb[9].mxu0 }
  0xfe   : > { %937 = vrot.lane.b32.xlu0 %v4458_v33, %s4337_s5  ;;  %v4471_v38 = vpop.f32.mrb[10].mxu0 }
  0xff   : > { %v4473_v39 = vpop.f32.mrb[11].mxu0 }
 0x102   : > { %v4475_v40 = vpop.f32.mrb[12].mxu0 }
 0x103   : > { %v4477_v41 = vpop.f32.mrb[13].mxu0 }
 0x106   : > { %v4485_v44 = vpop.f32.mrb[14].mxu0 }
 0x107   : > { %v4487_v45 = vpop.f32.mrb[15].mxu0 }
 0x15f   : > { %v558_v48 = vpop.permute.xlu1 %557 }
 0x160   : > { %v367_v42 = vpop.permute.xlu0 %366 }
 0x161   : > { %3898 = vmatpush3.xpose.msk.msra.mxu0 %vm171_vm0, %v367_v42 }
 0x162   : > { %3902 = vmatprep.subr.mxu0 %v4335_v22 }
 0x163   : > { %v635_v51 = vpop.permute.xlu1 %634 }
 0x164   : > { %3900 = vmatmul.mubr.msk.f32.vlgmr.msra.gmra.mrb[16].mxu0 %vm171_vm0, %v287_v27  ;;  %v444_v43 = vpop.permute.xlu0 %443 }
 0x165   : > { %3903 = vmatpush3.msra.mxu0 %v444_v43  ;;  %3904 = vmatprep.mubr.msk.f32.mxu0 %vm4336_vm1, %v4335_v22 }
 0x166   : > { %3907 = vmatprep.subr.mxu0 %v4335_v22 }
 0x168   : > { %v748_v56 = vpop.permute.xlu0 %747 }
 0x16c   : > { %v825_v59 = vpop.permute.xlu0 %824 }
 0x170   : > { %v938_v13 = vpop.permute.xlu0 %937 }
 0x237   : > { %v438_v47 = vpop.f32.mrb[16].mxu0 }
 0x238   : > { %v442_v49 = vmul.f32 %v438_v47, %v4492_v46  ;;  %v3901_v50 = vpop.f32.mrb[17].mxu0 }
 0x23a   : > { %3905 = vmatmul.mubr.msk.f32.vlgmr.msra.gmra.mrb[18].mxu0 %vm446_vm2, %v442_v49 }
 0x23b   : > { %3908 = vmatpush3.xpose.msk.msra.mxu0 %vm171_vm0, %v558_v48  ;;  %3909 = vmatprep.mubr.msk.f32.mxu0 %vm4336_vm1, %v4335_v22 }
 0x23c   : > { %3912 = vmatprep.subr.mxu0 %v4335_v22 }
 0x23e   : > { %3910 = vmatmul.mubr.msk.f32.vlgmr.msra.gmra.mrb[20].mxu0 %vm171_vm0, %v292_v25 }
 0x23f   : > { %3913 = vmatpush3.msra.mxu0 %v635_v51  ;;  %3914 = vmatprep.mubr.msk.f32.mxu0 %vm4336_vm1, %v4335_v22 }
 0x240   : > { %3917 = vmatprep.subr.mxu0 %v4335_v22 }
 0x30d   : > { %v516_v52 = vpop.f32.mrb[18].mxu0 }
 0x30e   : > { %v3906_v53 = vpop.f32.mrb[19].mxu0  ;;  %v520_v54 = vsel %vm171_vm0, %v516_v52, 0.0 }
 0x30f   : > { %521 = vadd.xlane.f32.xlu1 %v520_v54 }
 0x311   : > { %v629_v55 = vpop.f32.mrb[20].mxu0 }
 0x312   : > { %v633_v57 = vmul.f32 %v629_v55, %v4492_v46  ;;  %v3911_v58 = vpop.f32.mrb[21].mxu0 }
 0x314   : > { %3915 = vmatmul.mubr.msk.f32.vlgmr.msra.gmra.mrb[22].mxu0 %vm446_vm2, %v633_v57 }
 0x315   : > { %3918 = vmatpush3.xpose.msk.msra.mxu0 %vm171_vm0, %v748_v56  ;;  %3919 = vmatprep.mubr.msk.f32.mxu0 %vm4336_vm1, %v4335_v22 }
 0x316   : > { %3922 = vmatprep.subr.mxu0 %v4335_v22 }
 0x318   : > { %3920 = vmatmul.mubr.msk.f32.vlgmr.msra.gmra.mrb[24].mxu0 %vm171_vm0, %v297_v30 }
 0x319   : > { %3923 = vmatpush3.msra.mxu0 %v825_v59  ;;  %3924 = vmatprep.mubr.msk.f32.mxu0 %vm4336_vm1, %v4335_v22  ;;  %v312_v59 = vadd.f32 %v4452_v31, %v4443_v23 }
 0x31a   : > { %3927 = vmatprep.subr.mxu0 %v4335_v22 }
 0x39c   : > { %v522_v60 = vpop.xlane.xlu1 %521 }
 0x39d   : > { %v523_v61 = vrot.slane %v522_v60, 4 }
 0x39f   : > { %v524_v62 = vadd.f32 %v523_v61, %v522_v60 }
 0x3a1   : > { %v525_v63 = vrot.slane %v524_v62, 2 }
 0x3a3   : > { %v526_v0 = vadd.f32 %v525_v63, %v524_v62 }
 0x3a5   : > { %v527_v1 = vrot.slane %v526_v0, 1 }
 0x3a7   : > { %v528_v2 = vadd.f32 %v527_v1, %v526_v0 }
 0x3a9   : > { %4148 = vpush %v528_v2 }
 0x3da   : > { %s4149_s11 = spop %4148 }
 0x3db   : > { %s532_s14 = smul.f32 0.00390625, %s4149_s11 }
 0x3dd   : > { %v533_v3 = vstv %s532_s14 }
 0x3de   : > { %v4515_v4 = vsub.f32 %v516_v52, %v533_v3 }
 0x3e0   : > { %v535_v5 = vmul.f32 %v4515_v4, %v4515_v4 }
 0x3e2   : > { %v536_v6 = vsel %vm171_vm0, %v535_v5, 0.0 }
 0x3e3   : > { %537 = vadd.xlane.f32.xlu0 %v536_v6 }
 0x3e7   : > { %v4520_v7 = vpop.f32.mrb[22].mxu0 }
 0x3e8   : > { %v3916_v8 = vpop.f32.mrb[23].mxu0  ;;  %v710_v9 = vsel %vm171_vm0, %v4520_v7, 0.0 }
 0x3e9   : > { %711 = vadd.xlane.f32.xlu1 %v710_v9 }
 0x3eb   : > { %v819_v10 = vpop.f32.mrb[24].mxu0 }
 0x3ec   : > { %v823_v11 = vmul.f32 %v819_v10, %v4492_v46  ;;  %v3921_v12 = vpop.f32.mrb[25].mxu0 }
 0x3ee   : > { %3925 = vmatmul.mubr.msk.f32.vlgmr.msra.gmra.mrb[26].mxu0 %vm446_vm2, %v823_v11 }
 0x3ef   : > { %3928 = vmatpush3.xpose.msk.msra.mxu0 %vm171_vm0, %v938_v13  ;;  %3929 = vmatprep.mubr.msk.f32.mxu0 %vm4336_vm1, %v4335_v22 }
 0x3f0   : > { %3942 = vmatprep.subr.mxu0 %v4335_v22 }
 0x3f2   : > { %3930 = vmatmul.mubr.msk.f32.vlgmr.msra.gmra.mrb[28].mxu0 %vm171_vm0, %v4458_v33 }
 0x3f3   : > { %3944 = vmatprep.mubr.msk.f32.mxu0 %vm4336_vm1, %v4335_v22 }
 0x3f9   : > { %1127 = vrot.lane.b32.xlu0 %v4536_v14, %s4337_s5 }
 0x3fa   : > { %1014 = vrot.lane.b32.xlu1 %v4458_v33, %s4338_s6 }
 0x470   : > { %v538_v15 = vpop.xlane.xlu0 %537 }
 0x471   : > { %v539_v16 = vrot.slane %v538_v15, 4 }
 0x473   : > { %v540_v17 = vadd.f32 %v539_v16, %v538_v15 }
 0x474   : > { %v1128_v52 = vpop.permute.xlu0 %1127 }
 0x475   : > { %v541_v18 = vrot.slane %v540_v17, 2 }
 0x476   : > { %v712_v19 = vpop.xlane.xlu1 %711 }
 0x477   : > { %v542_v20 = vadd.f32 %v541_v18, %v540_v17  ;;  %v713_v26 = vrot.slane %v712_v19, 4 }
 0x479   : > { %v543_v21 = vrot.slane %v542_v20, 1  ;;  %v714_v27 = vadd.f32 %v713_v26, %v712_v19  ;;  %v4581_v26 = vadd.f32 %v4443_v23, %v4463_v35 }
 0x47a   : > { %v1015_v24 = vpop.permute.xlu1 %1014 }
 0x47b   : > { %3933 = vmatpush3.msra.mxu1 %v1015_v24  ;;  %v544_v25 = vadd.f32 %v543_v21, %v542_v20  ;;  %v715_v28 = vrot.slane %v714_v27, 2 }
 0x47c   : > { %3937 = vmatprep.subr.mxu1 %v4335_v22 }
 0x47d   : > { %4150 = vpush %v544_v25  ;;  %v716_v30 = vadd.f32 %v715_v28, %v714_v27 }
 0x47f   : > { %v717_v32 = vrot.slane %v716_v30, 1 }
 0x481   : > { %v718_v42 = vadd.f32 %v717_v32, %v716_v30 }
 0x4ae   : > { %s4151_s15 = spop %4150 }
 0x4af   : > { %s548_s18 = smul.f32 0.00390625, %s4151_s15 }
 0x4b1   : > { %s549_s19 = sadd.f32 1e-05, %s548_s18 }
 0x4b3   : > { %v550_v29 = vstv %s549_s19 }
 0x4b4   : > { %4277 = vrsqrt.f32 %v550_v29 }
 0x4be   : > { %v4278_v33 = vpop.eup %4277 }
 0x4bf   : > { %4152 = vpush %v4278_v33 }
 0x4c0   : > { %4154 = vpush %v718_v42 }
 0x4c1   : > { %v4543_v43 = vpop.f32.mrb[26].mxu0 }
 0x4c2   : > { %v3926_v47 = vpop.f32.mrb[27].mxu0  ;;  %v900_v48 = vsel %vm171_vm0, %v4543_v43, 0.0 }
 0x4c3   : > { %901 = vadd.xlane.f32.xlu0 %v900_v48 }
 0x4c5   : > { %v1009_v49 = vpop.f32.mrb[28].mxu0 }
 0x4c6   : > { %v1013_v50 = vmul.f32 %v1009_v49, %v4492_v46  ;;  %v3931_v51 = vpop.f32.mrb[29].mxu0 }
 0x4c8   : > { %3935 = vmatmul.mubr.msk.f32.vlgmr.msra.gmra.mrb[0].mxu1 %vm446_vm2, %v1013_v50 }
 0x4c9   : > { %3938 = vmatpush3.xpose.msk.msra.mxu1 %vm171_vm0, %v1128_v52  ;;  %3939 = vmatprep.mubr.msk.f32.mxu1 %vm4336_vm1, %v4335_v22 }
 0x4ca   : > { %3947 = vmatprep.subr.mxu1 %v4335_v22 }
 0x4cc   : > { %3940 = vmatmul.mubr.msk.f32.vlgmr.msra.gmra.mrb[2].mxu1 %vm171_vm0, %v4536_v14 }
 0x4cd   : > { %3949 = vmatprep.mubr.msk.f32.mxu1 %vm4336_vm1, %v4335_v22 }
 0x4f0   : > { %s4153_s20 = spop %4152 }
 0x4f1   : > { %v553_v53 = vstv %s4153_s20  ;;  %s4155_s21 = spop %4154 }
 0x4f2   : > { %v554_v54 = vmul.f32 %v553_v53, %v4515_v4  ;;  %s722_s22 = smul.f32 0.00390625, %s4155_s21 }
 0x4f4   : > { %555 = vst.msk [vmem:[#allocation2] sm:$0xff] %vm171_vm0, %v554_v54  ;;  %v723_v55 = vstv %s722_s22 }
 0x4f5   : > { %v724_v56 = vsub.f32 %v4520_v7, %v723_v55 }
 0x4f7   : > { %v725_v57 = vmul.f32 %v724_v56, %v724_v56 }
 0x4f9   : > { %v726_v58 = vsel %vm171_vm0, %v725_v57, 0.0 }
 0x4fa   : > { %727 = vadd.xlane.f32.xlu1 %v726_v58 }
 0x50b   : > { %1317 = vrot.lane.b32.xlu1 %v312_v59, %s4337_s5 }
 0x550   : > { %v902_v8 = vpop.xlane.xlu0 %901 }
 0x551   : > { %v903_v9 = vrot.slane %v902_v8, 4 }
 0x553   : > { %v904_v10 = vadd.f32 %v903_v9, %v902_v8  ;;  %v322_v9 = vadd.f32 %v4460_v34, %v4443_v23 }
 0x555   : > { %v905_v11 = vrot.slane %v904_v10, 2 }
 0x557   : > { %v906_v13 = vadd.f32 %v905_v11, %v904_v10 }
 0x559   : > { %v907_v15 = vrot.slane %v906_v13, 1 }
 0x55b   : > { %v908_v17 = vadd.f32 %v907_v15, %v906_v13 }
 0x587   : > { %v728_v60 = vpop.xlane.xlu1 %727 }
 0x588   : > { %v729_v61 = vrot.slane %v728_v60, 4 }
 0x58a   : > { %v730_v62 = vadd.f32 %v729_v61, %v728_v60 }
 0x58b   : > { %v1318_v63 = vpop.permute.xlu1 %1317 }
 0x58c   : > { %v731_v0 = vrot.slane %v730_v62, 2  ;;  %3948 = vmatpush3.xpose.msk.msra.mxu1 %vm171_vm0, %v1318_v63 }
 0x58d   : > { %3957 = vmatprep.subr.mxu1 %v4335_v22 }
 0x58e   : > { %v732_v1 = vadd.f32 %v731_v0, %v730_v62 }
 0x58f   : > { %3950 = vmatmul.mubr.msk.f32.vlgmr.msra.gmra.mrb[4].mxu1 %vm171_vm0, %v312_v59 }
 0x590   : > { %v733_v2 = vrot.slane %v732_v1, 1  ;;  %3959 = vmatprep.mubr.msk.f32.mxu1 %vm4336_vm1, %v4335_v22 }
 0x592   : > { %v734_v3 = vadd.f32 %v733_v2, %v732_v1 }
 0x594   : > { %4156 = vpush %v734_v3 }
 0x59b   : > { %v4569_v31 = vpop.f32.mrb[0].mxu1 }
 0x59c   : > { %v3936_v4 = vpop.f32.mrb[1].mxu1  ;;  %v1090_v5 = vsel %vm171_vm0, %v4569_v31, 0.0 }
 0x59d   : > { %1091 = vadd.xlane.f32.xlu1 %v1090_v5 }
 0x59f   : > { %v1199_v6 = vpop.f32.mrb[2].mxu1 }
 0x5a0   : > { %v3941_v7 = vpop.f32.mrb[3].mxu1  ;;  %v1203_v42 = vmul.f32 %v1199_v6, %v4492_v46 }
 0x5ae   : > { %1394 = vrot.lane.b32.xlu1 %v312_v59, %s4338_s6 }
 0x5c5   : > { %s4157_s23 = spop %4156 }
 0x5c6   : > { %s738_s24 = smul.f32 0.00390625, %s4157_s23 }
 0x5c8   : > { %s739_s25 = sadd.f32 1e-05, %s738_s24 }
 0x5ca   : > { %v740_v12 = vstv %s739_s25 }
 0x5cb   : > { %4279 = vrsqrt.f32 %v740_v12 }
 0x5d5   : > { %v4280_v16 = vpop.eup %4279 }
 0x5d6   : > { %4158 = vpush %v4280_v16 }
 0x5d7   : > { %4160 = vpush %v908_v17 }
 0x607   : > { %s4159_s26 = spop %4158 }
 0x608   : > { %v743_v18 = vstv %s4159_s26  ;;  %s4161_s27 = spop %4160 }
 0x609   : > { %v744_v19 = vmul.f32 %v743_v18, %v724_v56  ;;  %s912_s28 = smul.f32 0.00390625, %s4161_s27 }
 0x60b   : > { %745 = vst.msk [vmem:[#allocation2 + $0x8] sm:$0xff] %vm171_vm0, %v744_v19  ;;  %v913_v20 = vstv %s912_s28 }
 0x60c   : > { %v914_v21 = vsub.f32 %v4543_v43, %v913_v20 }
 0x60e   : > { %v915_v24 = vmul.f32 %v914_v21, %v914_v21 }
 0x610   : > { %v916_v25 = vsel %vm171_vm0, %v915_v24, 0.0 }
 0x611   : > { %917 = vadd.xlane.f32.xlu0 %v916_v25 }
 0x627   : > { %1204 = vrot.lane.b32.xlu0 %v4536_v14, %s4338_s6 }
 0x62a   : > { %v1092_v29 = vpop.xlane.xlu1 %1091 }
 0x62b   : > { %1507 = vrot.lane.b32.xlu0 %v4581_v26, %s4337_s5  ;;  %v1093_v52 = vrot.slane %v1092_v29, 4 }
 0x62d   : > { %v1094_v53 = vadd.f32 %v1093_v52, %v1092_v29 }
 0x62e   : > { %v1395_v48 = vpop.permute.xlu1 %1394 }
 0x62f   : > { %v1095_v54 = vrot.slane %v1094_v53, 2 }
 0x631   : > { %v1096_v56 = vadd.f32 %v1095_v54, %v1094_v53 }
 0x633   : > { %v1097_v57 = vrot.slane %v1096_v56, 1 }
 0x635   : > { %v1098_v59 = vadd.f32 %v1097_v57, %v1096_v56 }
 0x662   : > { %v1389_v27 = vpop.f32.mrb[4].mxu1 }
 0x663   : > { %v3951_v28 = vpop.f32.mrb[5].mxu1  ;;  %v1393_v14 = vmul.f32 %v1389_v27, %v4492_v46 }
 0x69e   : > { %v918_v30 = vpop.xlane.xlu0 %917 }
 0x69f   : > { %v919_v32 = vrot.slane %v918_v30, 4 }
 0x6a1   : > { %v920_v33 = vadd.f32 %v919_v32, %v918_v30 }
 0x6a2   : > { %v1205_v43 = vpop.permute.xlu0 %1204 }
 0x6a3   : > { %v921_v47 = vrot.slane %v920_v33, 2  ;;  %3943 = vmatpush3.msra.mxu0 %v1205_v43 }
 0x6a4   : > { %3945 = vmatmul.mubr.msk.f32.vlgmr.msra.gmra.mrb[30].mxu0 %vm446_vm2, %v1203_v42  ;;  %3952 = vmatprep.subr.mxu0 %v4335_v22 }
 0x6a5   : > { %3953 = vmatpush3.msra.mxu0 %v1395_v48  ;;  %3954 = vmatprep.mubr.msk.f32.mxu0 %vm4336_vm1, %v4335_v22  ;;  %v922_v35 = vadd.f32 %v921_v47, %v920_v33 }
 0x6a6   : > { %v1508_v49 = vpop.permute.xlu0 %1507  ;;  %3962 = vmatprep.subr.mxu0 %v4335_v22 }
 0x6a7   : > { %3958 = vmatpush3.xpose.msk.msra.mxu1 %vm171_vm0, %v1508_v49  ;;  %v923_v50 = vrot.slane %v922_v35, 1  ;;  %v327_v49 = vadd.f32 %v4443_v23, %v4469_v37 }
 0x6a8   : > { %3955 = vmatmul.mubr.msk.f32.vlgmr.msra.gmra.mrb[32].mxu0 %vm446_vm2, %v1393_v14  ;;  %3967 = vmatprep.subr.mxu1 %v4335_v22 }
 0x6a9   : > { %v924_v51 = vadd.f32 %v923_v50, %v922_v35  ;;  %3964 = vmatprep.mubr.msk.f32.mxu0 %vm4336_vm1, %v4335_v22 }
 0x6aa   : > { %3960 = vmatmul.mubr.msk.f32.vlgmr.msra.gmra.mrb[6].mxu1 %vm171_vm0, %v4581_v26 }
 0x6ab   : > { %4162 = vpush %v924_v51  ;;  %3969 = vmatprep.mubr.msk.f32.mxu1 %vm4336_vm1, %v4335_v22 }
 0x6dc   : > { %s4163_s29 = spop %4162 }
 0x6dd   : > { %s928_s30 = smul.f32 0.00390625, %s4163_s29 }
 0x6df   : > { %s929_s3 = sadd.f32 1e-05, %s928_s30 }
 0x6e1   : > { %v930_v55 = vstv %s929_s3 }
 0x6e2   : > { %4281 = vrsqrt.f32 %v930_v55 }
 0x6ec   : > { %v4282_v58 = vpop.eup %4281 }
 0x6ed   : > { %4164 = vpush %v4282_v58 }
 0x6ee   : > { %4166 = vpush %v1098_v59 }
 0x71e   : > { %s4165_s4 = spop %4164 }
 0x71f   : > { %v933_v60 = vstv %s4165_s4  ;;  %s4167_s7 = spop %4166 }
 0x720   : > { %v934_v61 = vmul.f32 %v933_v60, %v914_v21  ;;  %s1102_s8 = smul.f32 0.00390625, %s4167_s7 }
 0x722   : > { %935 = vst.msk [vmem:[#allocation2 + $0x10] sm:$0xff] %vm171_vm0, %v934_v61  ;;  %v1103_v62 = vstv %s1102_s8 }
 0x723   : > { %v1104_v63 = vsub.f32 %v4569_v31, %v1103_v62 }
 0x725   : > { %v1105_v0 = vmul.f32 %v1104_v63, %v1104_v63 }
 0x727   : > { %v1106_v1 = vsel %vm171_vm0, %v1105_v0, 0.0 }
 0x728   : > { %1107 = vadd.xlane.f32.xlu0 %v1106_v1 }
 0x777   : > { %v1276_v2 = vpop.f32.mrb[30].mxu0 }
 0x778   : > { %v3946_v3 = vpop.f32.mrb[31].mxu0  ;;  %v1280_v4 = vsel %vm171_vm0, %v1276_v2, 0.0 }
 0x779   : > { %1281 = vadd.xlane.f32.xlu0 %v1280_v4 }
 0x77b   : > { %v4605_v5 = vpop.f32.mrb[32].mxu0 }
 0x77c   : > { %v3956_v6 = vpop.f32.mrb[33].mxu0  ;;  %v1470_v31 = vsel %vm171_vm0, %v4605_v5, 0.0 }
 0x77d   : > { %v1579_v7 = vpop.f32.mrb[6].mxu1 }
 0x77e   : > { %v3961_v8 = vpop.f32.mrb[7].mxu1  ;;  %v1583_v27 = vmul.f32 %v1579_v7, %v4492_v46 }
 0x78f   : > { %1697 = vrot.lane.b32.xlu0 %v322_v9, %s4337_s5 }
 0x793   : > { %1584 = vrot.lane.b32.xlu0 %v4581_v26, %s4338_s6 }
 0x7b2   : > { %1471 = vadd.xlane.f32.xlu0 %v1470_v31 }
 0x7b5   : > { %v1108_v10 = vpop.xlane.xlu0 %1107 }
 0x7b6   : > { %v1109_v11 = vrot.slane %v1108_v10, 4 }
 0x7b8   : > { %v1110_v12 = vadd.f32 %v1109_v11, %v1108_v10 }
 0x7ba   : > { %v1111_v13 = vrot.slane %v1110_v12, 2 }
 0x7bc   : > { %v1112_v15 = vadd.f32 %v1111_v13, %v1110_v12 }
 0x7be   : > { %v1113_v16 = vrot.slane %v1112_v15, 1 }
 0x7c0   : > { %v1114_v17 = vadd.f32 %v1113_v16, %v1112_v15  ;;  %v332_v15 = vadd.f32 %v4465_v36, %v4443_v23 }
 0x7c2   : > { %4168 = vpush %v1114_v17 }
 0x7c8   : > { %1774 = vrot.lane.b32.xlu0 %v322_v9, %s4338_s6 }
 0x7f3   : > { %s4169_s11 = spop %4168 }
 0x7f4   : > { %s1118_s14 = smul.f32 0.00390625, %s4169_s11 }
 0x7f6   : > { %s1119_s15 = sadd.f32 1e-05, %s1118_s14 }
 0x7f8   : > { %v1120_v34 = vstv %s1119_s15 }
 0x7f9   : > { %4283 = vrsqrt.f32 %v1120_v34 }
 0x803   : > { %v4284_v18 = vpop.eup %4283 }
 0x804   : > { %4170 = vpush %v4284_v18 }
 0x806   : > { %v1282_v19 = vpop.xlane.xlu0 %1281 }
 0x807   : > { %v1283_v20 = vrot.slane %v1282_v19, 4 }
 0x809   : > { %v1284_v21 = vadd.f32 %v1283_v20, %v1282_v19 }
 0x80a   : > { %v1698_v24 = vpop.permute.xlu0 %1697 }
 0x80b   : > { %v1285_v25 = vrot.slane %v1284_v21, 2  ;;  %3968 = vmatpush3.xpose.msk.msra.mxu1 %vm171_vm0, %v1698_v24 }
 0x80c   : > { %3977 = vmatprep.subr.mxu1 %v4335_v22 }
 0x80d   : > { %v1286_v26 = vadd.f32 %v1285_v25, %v1284_v21 }
 0x80e   : > { %3970 = vmatmul.mubr.msk.f32.vlgmr.msra.gmra.mrb[8].mxu1 %vm171_vm0, %v322_v9  ;;  %v1585_v28 = vpop.permute.xlu0 %1584 }
 0x80f   : > { %3963 = vmatpush3.msra.mxu0 %v1585_v28  ;;  %v1287_v29 = vrot.slane %v1286_v26, 1  ;;  %3979 = vmatprep.mubr.msk.f32.mxu1 %vm4336_vm1, %v4335_v22 }
 0x810   : > { %3965 = vmatmul.mubr.msk.f32.vlgmr.msra.gmra.mrb[34].mxu0 %vm446_vm2, %v1583_v27  ;;  %3972 = vmatprep.subr.mxu0 %v4335_v22 }
 0x811   : > { %v1288_v30 = vadd.f32 %v1287_v29, %v1286_v26  ;;  %3974 = vmatprep.mubr.msk.f32.mxu0 %vm4336_vm1, %v4335_v22 }
 0x813   : > { %4172 = vpush %v1288_v30 }
 0x835   : > { %s4171_s18 = spop %4170 }
 0x836   : > { %v1123_v32 = vstv %s4171_s18 }
 0x837   : > { %v1124_v33 = vmul.f32 %v1123_v32, %v1104_v63 }
 0x839   : > { %1125 = vst.msk [vmem:[#allocation2 + $0x18] sm:$0xff] %vm171_vm0, %v1124_v33 }
 0x83f   : > { %v1472_v42 = vpop.xlane.xlu0 %1471 }
 0x840   : > { %v1473_v63 = vrot.slane %v1472_v42, 4 }
 0x842   : > { %v1474_v0 = vadd.f32 %v1473_v63, %v1472_v42 }
 0x843   : > { %v1775_v43 = vpop.permute.xlu0 %1774 }
 0x844   : > { %s4173_s19 = spop %4172  ;;  %3973 = vmatpush3.msra.mxu0 %v1775_v43  ;;  %v1475_v1 = vrot.slane %v1474_v0, 2 }
 0x845   : > { %s1292_s20 = smul.f32 0.00390625, %s4173_s19  ;;  %3982 = vmatprep.subr.mxu0 %v4335_v22 }
 0x846   : > { %v1476_v3 = vadd.f32 %v1475_v1, %v1474_v0 }
 0x847   : > { %v1293_v47 = vstv %s1292_s20 }
 0x848   : > { %v1294_v48 = vsub.f32 %v1276_v2, %v1293_v47  ;;  %v1477_v4 = vrot.slane %v1476_v3, 1 }
 0x84a   : > { %v1295_v35 = vmul.f32 %v1294_v48, %v1294_v48  ;;  %v1478_v7 = vadd.f32 %v1477_v4, %v1476_v3 }
 0x84c   : > { %v1296_v14 = vsel %vm171_vm0, %v1295_v35, 0.0 }
 0x84d   : > { %1297 = vadd.xlane.f32.xlu1 %v1296_v14 }
 0x85e   : > { %1887 = vrot.lane.b32.xlu1 %v327_v49, %s4337_s5 }
 0x8da   : > { %v1298_v50 = vpop.xlane.xlu1 %1297 }
 0x8db   : > { %v1299_v51 = vrot.slane %v1298_v50, 4 }
 0x8dd   : > { %v1300_v52 = vadd.f32 %v1299_v51, %v1298_v50 }
 0x8de   : > { %v1888_v53 = vpop.permute.xlu1 %1887 }
 0x8df   : > { %v1301_v54 = vrot.slane %v1300_v52, 2  ;;  %3978 = vmatpush3.xpose.msk.msra.mxu1 %vm171_vm0, %v1888_v53 }
 0x8e0   : > { %3987 = vmatprep.subr.mxu1 %v4335_v22 }
 0x8e1   : > { %v1769_v55 = vpop.f32.mrb[8].mxu1  ;;  %v1302_v56 = vadd.f32 %v1301_v54, %v1300_v52 }
 0x8e2   : > { %v1773_v57 = vmul.f32 %v1769_v55, %v4492_v46  ;;  %v3971_v58 = vpop.f32.mrb[9].mxu1  ;;  %3980 = vmatmul.mubr.msk.f32.vlgmr.msra.gmra.mrb[10].mxu1 %vm171_vm0, %v327_v49 }
 0x8e3   : > { %v4635_v59 = vpop.f32.mrb[34].mxu0  ;;  %v1303_v37 = vrot.slane %v1302_v56, 1  ;;  %3989 = vmatprep.mubr.msk.f32.mxu1 %vm4336_vm1, %v4335_v22 }
 0x8e4   : > { %v3966_v60 = vpop.f32.mrb[35].mxu0  ;;  %3975 = vmatmul.mubr.msk.f32.vlgmr.msra.gmra.mrb[36].mxu0 %vm446_vm2, %v1773_v57  ;;  %v1660_v61 = vsel %vm171_vm0, %v4635_v59, 0.0 }
 0x8e5   : > { %1661 = vadd.xlane.f32.xlu0 %v1660_v61  ;;  %v1304_v62 = vadd.f32 %v1303_v37, %v1302_v56  ;;  %3984 = vmatprep.mubr.msk.f32.mxu0 %vm4336_vm1, %v4335_v22  ;;  %v337_v56 = vadd.f32 %v4443_v23, %v4473_v39 }
 0x8e7   : > { %4174 = vpush %v1304_v62 }
 0x8fb   : > { %1964 = vrot.lane.b32.xlu0 %v327_v49, %s4338_s6 }
 0x918   : > { %s4175_s21 = spop %4174 }
 0x919   : > { %s1308_s22 = smul.f32 0.00390625, %s4175_s21 }
 0x91b   : > { %s1309_s23 = sadd.f32 1e-05, %s1308_s22 }
 0x91d   : > { %v1310_v2 = vstv %s1309_s23 }
 0x91e   : > { %4285 = vrsqrt.f32 %v1310_v2 }
 0x928   : > { %v4286_v6 = vpop.eup %4285 }
 0x929   : > { %4176 = vpush %v4286_v6 }
 0x92a   : > { %4178 = vpush %v1478_v7 }
 0x95a   : > { %s4177_s24 = spop %4176 }
 0x95b   : > { %v1313_v8 = vstv %s4177_s24  ;;  %s4179_s25 = spop %4178 }
 0x95c   : > { %v1314_v9 = vmul.f32 %v1313_v8, %v1294_v48  ;;  %s1482_s26 = smul.f32 0.00390625, %s4179_s25 }
 0x95e   : > { %1315 = vst.msk [vmem:[#allocation2 + $0x20] sm:$0xff] %vm171_vm0, %v1314_v9  ;;  %v1483_v31 = vstv %s1482_s26 }
 0x95f   : > { %v1484_v10 = vsub.f32 %v4605_v5, %v1483_v31 }
 0x961   : > { %v1485_v11 = vmul.f32 %v1484_v10, %v1484_v10 }
 0x963   : > { %v1486_v12 = vsel %vm171_vm0, %v1485_v11, 0.0 }
 0x964   : > { %1487 = vadd.xlane.f32.xlu1 %v1486_v12 }
 0x972   : > { %v1662_v13 = vpop.xlane.xlu0 %1661 }
 0x973   : > { %v1663_v30 = vrot.slane %v1662_v13, 4 }
 0x975   : > { %2077 = vrot.lane.b32.xlu1 %v332_v15, %s4337_s5  ;;  %v1664_v32 = vadd.f32 %v1663_v30, %v1662_v13 }
 0x976   : > { %v1965_v16 = vpop.permute.xlu0 %1964 }
 0x977   : > { %3983 = vmatpush3.msra.mxu0 %v1965_v16  ;;  %v1665_v33 = vrot.slane %v1664_v32, 2 }
 0x978   : > { %3992 = vmatprep.subr.mxu0 %v4335_v22 }
 0x979   : > { %v1666_v43 = vadd.f32 %v1665_v33, %v1664_v32 }
 0x97b   : > { %v1667_v47 = vrot.slane %v1666_v43, 1 }
 0x97d   : > { %v1668_v35 = vadd.f32 %v1667_v47, %v1666_v43 }
 0x9b5   : > { %v1959_v17 = vpop.f32.mrb[10].mxu1 }
 0x9b6   : > { %v1963_v34 = vmul.f32 %v1959_v17, %v4492_v46  ;;  %v3981_v18 = vpop.f32.mrb[11].mxu1 }
 0x9b7   : > { %v4653_v19 = vpop.f32.mrb[36].mxu0 }
 0x9b8   : > { %v3976_v5 = vpop.f32.mrb[37].mxu0  ;;  %3985 = vmatmul.mubr.msk.f32.vlgmr.msra.gmra.mrb[38].mxu0 %vm446_vm2, %v1963_v34  ;;  %v1850_v20 = vsel %vm171_vm0, %v4653_v19, 0.0 }
 0x9b9   : > { %1851 = vadd.xlane.f32.xlu0 %v1850_v20  ;;  %3994 = vmatprep.mubr.msk.f32.mxu0 %vm4336_vm1, %v4335_v22 }
 0x9cf   : > { %2154 = vrot.lane.b32.xlu0 %v332_v15, %s4338_s6 }
 0x9f1   : > { %v1488_v36 = vpop.xlane.xlu1 %1487 }
 0x9f2   : > { %v1489_v21 = vrot.slane %v1488_v36, 4 }
 0x9f4   : > { %v1490_v24 = vadd.f32 %v1489_v21, %v1488_v36  ;;  %v342_v36 = vadd.f32 %v4471_v38, %v4443_v23 }
 0x9f5   : > { %v2078_v25 = vpop.permute.xlu1 %2077 }
 0x9f6   : > { %v1491_v26 = vrot.slane %v1490_v24, 2  ;;  %3988 = vmatpush3.xpose.msk.msra.mxu1 %vm171_vm0, %v2078_v25 }
 0x9f7   : > { %3997 = vmatprep.subr.mxu1 %v4335_v22 }
 0x9f8   : > { %v1492_v27 = vadd.f32 %v1491_v26, %v1490_v24 }
 0x9f9   : > { %3990 = vmatmul.mubr.msk.f32.vlgmr.msra.gmra.mrb[12].mxu1 %vm171_vm0, %v332_v15 }
 0x9fa   : > { %v1493_v28 = vrot.slane %v1492_v27, 1  ;;  %3999 = vmatprep.mubr.msk.f32.mxu1 %vm4336_vm1, %v4335_v22 }
 0x9fc   : > { %v1494_v29 = vadd.f32 %v1493_v28, %v1492_v27 }
 0x9fe   : > { %4180 = vpush %v1494_v29 }
 0xa2f   : > { %s4181_s27 = spop %4180 }
 0xa30   : > { %s1498_s28 = smul.f32 0.00390625, %s4181_s27 }
 0xa32   : > { %s1499_s29 = sadd.f32 1e-05, %s1498_s28 }
 0xa34   : > { %v1500_v42 = vstv %s1499_s29 }
 0xa35   : > { %4287 = vrsqrt.f32 %v1500_v42 }
 0xa3f   : > { %v4288_v48 = vpop.eup %4287 }
 0xa40   : > { %4182 = vpush %v4288_v48 }
 0xa41   : > { %4184 = vpush %v1668_v35 }
 0xa46   : > { %v1852_v14 = vpop.xlane.xlu0 %1851 }
 0xa47   : > { %v1853_v8 = vrot.slane %v1852_v14, 4 }
 0xa49   : > { %v1854_v9 = vadd.f32 %v1853_v8, %v1852_v14 }
 0xa4a   : > { %v2155_v49 = vpop.permute.xlu0 %2154 }
 0xa4b   : > { %3993 = vmatpush3.msra.mxu0 %v2155_v49  ;;  %v1855_v31 = vrot.slane %v1854_v9, 2 }
 0xa4c   : > { %4002 = vmatprep.subr.mxu0 %v4335_v22 }
 0xa4d   : > { %v1856_v11 = vadd.f32 %v1855_v31, %v1854_v9 }
 0xa4f   : > { %v1857_v12 = vrot.slane %v1856_v11, 1 }
 0xa51   : > { %v1858_v15 = vadd.f32 %v1857_v12, %v1856_v11 }
 0xa71   : > { %s4183_s30 = spop %4182 }
 0xa72   : > { %v1503_v50 = vstv %s4183_s30  ;;  %s4185_s3 = spop %4184 }
 0xa73   : > { %v1504_v51 = vmul.f32 %v1503_v50, %v1484_v10  ;;  %s1672_s4 = smul.f32 0.00390625, %s4185_s3 }
 0xa75   : > { %1505 = vst.msk [vmem:[#allocation2 + $0x28] sm:$0xff] %vm171_vm0, %v1504_v51  ;;  %v1673_v52 = vstv %s1672_s4 }
 0xa76   : > { %v1674_v53 = vsub.f32 %v4635_v59, %v1673_v52 }
 0xa78   : > { %v1675_v54 = vmul.f32 %v1674_v53, %v1674_v53 }
 0xa7a   : > { %v1676_v55 = vsel %vm171_vm0, %v1675_v54, 0.0 }
 0xa7b   : > { %1677 = vadd.xlane.f32.xlu1 %v1676_v55 }
 0xa8b   : > { %v4672_v57 = vpop.f32.mrb[38].mxu0 }
 0xa8c   : > { %2267 = vrot.lane.b32.xlu1 %v337_v56, %s4337_s5  ;;  %v3986_v58 = vpop.f32.mrb[39].mxu0  ;;  %v2040_v37 = vsel %vm171_vm0, %v4672_v57, 0.0 }
 0xa8d   : > { %2041 = vadd.xlane.f32.xlu0 %v2040_v37 }
 0xaa3   : > { %2344 = vrot.lane.b32.xlu0 %v337_v56, %s4338_s6 }
 0xacc   : > { %v2149_v60 = vpop.f32.mrb[12].mxu1 }
 0xacd   : > { %v2153_v59 = vmul.f32 %v2149_v60, %v4492_v46  ;;  %v3991_v61 = vpop.f32.mrb[13].mxu1 }
 0xacf   : > { %3995 = vmatmul.mubr.msk.f32.vlgmr.msra.gmra.mrb[40].mxu0 %vm446_vm2, %v2153_v59  ;;  %v4715_v59 = vld [vmem:[%s4905_s1 + $0x30] ss:$0 sm:$0xff] }
 0xad0   : > { %4004 = vmatprep.mubr.msk.f32.mxu0 %vm4336_vm1, %v4335_v22  ;;  %v347_v61 = vadd.f32 %v4715_v59, %v4477_v41 }
 0xb08   : > { %v1678_v39 = vpop.xlane.xlu1 %1677 }
 0xb09   : > { %v1679_v62 = vrot.slane %v1678_v39, 4 }
 0xb0b   : > { %v1680_v63 = vadd.f32 %v1679_v62, %v1678_v39 }
 0xb0c   : > { %v2268_v0 = vpop.permute.xlu1 %2267 }
 0xb0d   : > { %v1681_v1 = vrot.slane %v1680_v63, 2  ;;  %3998 = vmatpush3.xpose.msk.msra.mxu1 %vm171_vm0, %v2268_v0 }
 0xb0e   : > { %4007 = vmatprep.subr.mxu1 %v4335_v22 }
 0xb0f   : > { %v1682_v2 = vadd.f32 %v1681_v1, %v1680_v63 }
 0xb10   : > { %4000 = vmatmul.mubr.msk.f32.vlgmr.msra.gmra.mrb[14].mxu1 %vm171_vm0, %v337_v56 }
 0xb11   : > { %v1683_v3 = vrot.slane %v1682_v2, 1  ;;  %4009 = vmatprep.mubr.msk.f32.mxu1 %vm4336_vm1, %v4335_v22 }
 0xb13   : > { %v1684_v4 = vadd.f32 %v1683_v3, %v1682_v2 }
 0xb15   : > { %4186 = vpush %v1684_v4 }
 0xb1a   : > { %v2042_v6 = vpop.xlane.xlu0 %2041 }
 0xb1b   : > { %v2043_v48 = vrot.slane %v2042_v6, 4 }
 0xb1d   : > { %v2044_v35 = vadd.f32 %v2043_v48, %v2042_v6 }
 0xb1e   : > { %v2345_v7 = vpop.permute.xlu0 %2344 }
 0xb1f   : > { %4003 = vmatpush3.msra.mxu0 %v2345_v7  ;;  %v2045_v14 = vrot.slane %v2044_v35, 2 }
 0xb20   : > { %4012 = vmatprep.subr.mxu0 %v4335_v22 }
 0xb21   : > { %v2046_v50 = vadd.f32 %v2045_v14, %v2044_v35 }
 0xb23   : > { %v2047_v51 = vrot.slane %v2046_v50, 1 }
 0xb46   : > { %s4187_s7 = spop %4186 }
 0xb47   : > { %s1688_s8 = smul.f32 0.00390625, %s4187_s7 }
 0xb49   : > { %s1689_s11 = sadd.f32 1e-05, %s1688_s8 }
 0xb4b   : > { %v1690_v10 = vstv %s1689_s11 }
 0xb4c   : > { %4289 = vrsqrt.f32 %v1690_v10 }
 0xb56   : > { %v4290_v13 = vpop.eup %4289 }
 0xb57   : > { %4188 = vpush %v4290_v13 }
 0xb58   : > { %4190 = vpush %v1858_v15 }
 0xb88   : > { %s4189_s14 = spop %4188 }
 0xb89   : > { %v1693_v16 = vstv %s4189_s14  ;;  %s4191_s15 = spop %4190 }
 0xb8a   : > { %v1694_v17 = vmul.f32 %v1693_v16, %v1674_v53  ;;  %s1862_s18 = smul.f32 0.00390625, %s4191_s15  ;;  %v2048_v53 = vadd.f32 %v2047_v51, %v2046_v50 }
 0xb8c   : > { %1695 = vst.msk [vmem:[#allocation2 + $0x30] sm:$0xff] %vm171_vm0, %v1694_v17  ;;  %v1863_v34 = vstv %s1862_s18 }
 0xb8d   : > { %v1864_v18 = vsub.f32 %v4653_v19, %v1863_v34 }
 0xb8f   : > { %v1865_v5 = vmul.f32 %v1864_v18, %v1864_v18 }
 0xb91   : > { %v1866_v20 = vsel %vm171_vm0, %v1865_v5, 0.0 }
 0xb92   : > { %1867 = vadd.xlane.f32.xlu1 %v1866_v20 }
 0xba2   : > { %v4693_v21 = vpop.f32.mrb[40].mxu0 }
 0xba3   : > { %2457 = vrot.lane.b32.xlu1 %v342_v36, %s4337_s5  ;;  %v3996_v24 = vpop.f32.mrb[41].mxu0  ;;  %v2230_v25 = vsel %vm171_vm0, %v4693_v21, 0.0 }
 0xba4   : > { %2231 = vadd.xlane.f32.xlu0 %v2230_v25 }
 0xbba   : > { %2534 = vrot.lane.b32.xlu0 %v342_v36, %s4338_s6 }
 0xbe3   : > { %v2339_v26 = vpop.f32.mrb[14].mxu1 }
 0xbe4   : > { %v2343_v19 = vmul.f32 %v2339_v26, %v4492_v46  ;;  %v4001_v27 = vpop.f32.mrb[15].mxu1  ;;  %v352_v26 = vadd.f32 %v4715_v59, %v4475_v40 }
 0xbe6   : > { %4005 = vmatmul.mubr.msk.f32.vlgmr.msra.gmra.mrb[42].mxu0 %vm446_vm2, %v2343_v19 }
 0xbe7   : > { %4014 = vmatprep.mubr.msk.f32.mxu0 %vm4336_vm1, %v4335_v22 }
 0xc1f   : > { %v1868_v23 = vpop.xlane.xlu1 %1867 }
 0xc20   : > { %v1869_v38 = vrot.slane %v1868_v23, 4 }
 0xc22   : > { %v1870_v28 = vadd.f32 %v1869_v38, %v1868_v23 }
 0xc23   : > { %v2458_v29 = vpop.permute.xlu1 %2457 }
 0xc24   : > { %v1871_v30 = vrot.slane %v1870_v28, 2  ;;  %4008 = vmatpush3.xpose.msk.msra.mxu1 %vm171_vm0, %v2458_v29 }
 0xc25   : > { %4017 = vmatprep.subr.mxu1 %v4335_v22 }
 0xc26   : > { %v1872_v32 = vadd.f32 %v1871_v30, %v1870_v28 }
 0xc27   : > { %4010 = vmatmul.mubr.msk.f32.vlgmr.msra.gmra.mrb[16].mxu1 %vm171_vm0, %v342_v36 }
 0xc28   : > { %v1873_v33 = vrot.slane %v1872_v32, 1  ;;  %4019 = vmatprep.mubr.msk.f32.mxu1 %vm4336_vm1, %v4335_v22 }
 0xc2a   : > { %v1874_v42 = vadd.f32 %v1873_v33, %v1872_v32 }
 0xc2c   : > { %4192 = vpush %v1874_v42 }
 0xc31   : > { %v2232_v43 = vpop.xlane.xlu0 %2231 }
 0xc32   : > { %v2233_v10 = vrot.slane %v2232_v43, 4 }
 0xc34   : > { %v2234_v11 = vadd.f32 %v2233_v10, %v2232_v43 }
 0xc35   : > { %v2535_v47 = vpop.permute.xlu0 %2534 }
 0xc36   : > { %4013 = vmatpush3.msra.mxu0 %v2535_v47  ;;  %v2235_v12 = vrot.slane %v2234_v11, 2 }
 0xc37   : > { %4022 = vmatprep.subr.mxu0 %v4335_v22 }
 0xc38   : > { %v2236_v15 = vadd.f32 %v2235_v12, %v2234_v11 }
 0xc3a   : > { %v2237_v16 = vrot.slane %v2236_v15, 1 }
 0xc3c   : > { %v2238_v34 = vadd.f32 %v2237_v16, %v2236_v15 }
 0xc5d   : > { %s4193_s19 = spop %4192 }
 0xc5e   : > { %s1878_s20 = smul.f32 0.00390625, %s4193_s19 }
 0xc60   : > { %s1879_s21 = sadd.f32 1e-05, %s1878_s20 }
 0xc62   : > { %v1880_v49 = vstv %s1879_s21 }
 0xc63   : > { %4291 = vrsqrt.f32 %v1880_v49 }
 0xc6d   : > { %v4292_v52 = vpop.eup %4291 }
 0xc6e   : > { %4194 = vpush %v4292_v52 }
 0xc6f   : > { %4196 = vpush %v2048_v53 }
 0xc9f   : > { %s4195_s22 = spop %4194 }
 0xca0   : > { %v1883_v54 = vstv %s4195_s22  ;;  %s4197_s23 = spop %4196 }
 0xca1   : > { %v1884_v55 = vmul.f32 %v1883_v54, %v1864_v18  ;;  %s2052_s24 = smul.f32 0.00390625, %s4197_s23 }
 0xca3   : > { %1885 = vst.msk [vmem:[#allocation2 + $0x38] sm:$0xff] %vm171_vm0, %v1884_v55  ;;  %v2053_v56 = vstv %s2052_s24 }
 0xca4   : > { %v2054_v58 = vsub.f32 %v4672_v57, %v2053_v56 }
 0xca6   : > { %v2055_v37 = vmul.f32 %v2054_v58, %v2054_v58 }
 0xca8   : > { %v2056_v60 = vsel %vm171_vm0, %v2055_v37, 0.0 }
 0xca9   : > { %2057 = vadd.xlane.f32.xlu1 %v2056_v60 }
 0xcb9   : > { %v4719_v39 = vpop.f32.mrb[42].mxu0 }
 0xcba   : > { %2647 = vrot.lane.b32.xlu1 %v347_v61, %s4337_s5  ;;  %v4006_v62 = vpop.f32.mrb[43].mxu0  ;;  %v2420_v57 = vsel %vm171_vm0, %v4719_v39, 0.0 }
 0xcbb   : > { %2421 = vadd.xlane.f32.xlu0 %v2420_v57 }
 0xcd1   : > { %2724 = vrot.lane.b32.xlu0 %v347_v61, %s4338_s6 }
 0xcfa   : > { %v2529_v63 = vpop.f32.mrb[16].mxu1 }
 0xcfb   : > { %v2533_v0 = vmul.f32 %v2529_v63, %v4492_v46  ;;  %v4011_v1 = vpop.f32.mrb[17].mxu1  ;;  %v357_v63 = vadd.f32 %v4715_v59, %v4487_v45 }
 0xcfd   : > { %4015 = vmatmul.mubr.msk.f32.vlgmr.msra.gmra.mrb[44].mxu0 %vm446_vm2, %v2533_v0 }
 0xcfe   : > { %4024 = vmatprep.mubr.msk.f32.mxu0 %vm4336_vm1, %v4335_v22 }
 0xd36   : > { %v2058_v41 = vpop.xlane.xlu1 %2057 }
 0xd37   : > { %v2059_v2 = vrot.slane %v2058_v41, 4 }
 0xd39   : > { %v2060_v3 = vadd.f32 %v2059_v2, %v2058_v41 }
 0xd3a   : > { %v2648_v4 = vpop.permute.xlu1 %2647 }
 0xd3b   : > { %v2061_v6 = vrot.slane %v2060_v3, 2  ;;  %4018 = vmatpush3.xpose.msk.msra.mxu1 %vm171_vm0, %v2648_v4 }
 0xd3c   : > { %4027 = vmatprep.subr.mxu1 %v4335_v22 }
 0xd3d   : > { %v2062_v7 = vadd.f32 %v2061_v6, %v2060_v3 }
 0xd3e   : > { %4020 = vmatmul.mubr.msk.f32.vlgmr.msra.gmra.mrb[18].mxu1 %vm171_vm0, %v347_v61 }
 0xd3f   : > { %v2063_v8 = vrot.slane %v2062_v7, 1  ;;  %4029 = vmatprep.mubr.msk.f32.mxu1 %vm4336_vm1, %v4335_v22 }
 0xd41   : > { %v2064_v46 = vadd.f32 %v2063_v8, %v2062_v7 }
 0xd43   : > { %4198 = vpush %v2064_v46 }
 0xd48   : > { %v2422_v9 = vpop.xlane.xlu0 %2421 }
 0xd49   : > { %v2423_v49 = vrot.slane %v2422_v9, 4 }
 0xd4b   : > { %v2424_v50 = vadd.f32 %v2423_v49, %v2422_v9 }
 0xd4c   : > { %v2725_v31 = vpop.permute.xlu0 %2724 }
 0xd4d   : > { %4023 = vmatpush3.msra.mxu0 %v2725_v31  ;;  %v2425_v51 = vrot.slane %v2424_v50, 2 }
 0xd4e   : > { %4032 = vmatprep.subr.mxu0 %v4335_v22 }
 0xd4f   : > { %v2426_v53 = vadd.f32 %v2425_v51, %v2424_v50 }
 0xd51   : > { %v2427_v54 = vrot.slane %v2426_v53, 1 }
 0xd53   : > { %v2428_v56 = vadd.f32 %v2427_v54, %v2426_v53  ;;  %v3411_v53 = vld [vmem:[#allocation2 + $0x28] sm:$0xff]  ;;  %v3410_v54 = vld [vmem:[#allocation2 + $0x20] sm:$0xff] }
 0xd74   : > { %s4199_s27 = spop %4198 }
 0xd75   : > { %s2068_s28 = smul.f32 0.00390625, %s4199_s27 }
 0xd77   : > { %s2069_s29 = sadd.f32 1e-05, %s2068_s28 }
 0xd79   : > { %v2070_v13 = vstv %s2069_s29 }
 0xd7a   : > { %4293 = vrsqrt.f32 %v2070_v13 }
 0xd84   : > { %v4294_v17 = vpop.eup %4293 }
 0xd85   : > { %4200 = vpush %v4294_v17 }
 0xd86   : > { %4202 = vpush %v2238_v34 }
 0xdb6   : > { %s4201_s30 = spop %4200 }
 0xdb7   : > { %v2073_v18 = vstv %s4201_s30  ;;  %s4203_s3 = spop %4202 }
 0xdb8   : > { %v2074_v5 = vmul.f32 %v2073_v18, %v2054_v58  ;;  %s2242_s4 = smul.f32 0.00390625, %s4203_s3 }
 0xdba   : > { %2075 = vst.msk [vmem:[#allocation2 + $0x40] sm:$0xff] %vm171_vm0, %v2074_v5  ;;  %v2243_v20 = vstv %s2242_s4 }
 0xdbb   : > { %v2244_v36 = vsub.f32 %v4693_v21, %v2243_v20  ;;  %v4749_v21 = vld [vmem:[%s4905_s1 + $0x50] sm:$0xff] }
 0xdbd   : > { %v2245_v24 = vmul.f32 %v2244_v36, %v2244_v36 }
 0xdbf   : > { %v2246_v25 = vsel %vm171_vm0, %v2245_v24, 0.0 }
 0xdc0   : > { %2247 = vadd.xlane.f32.xlu1 %v2246_v25 }
 0xdd0   : > { %v4740_v19 = vpop.f32.mrb[44].mxu0 }
 0xdd1   : > { %2837 = vrot.lane.b32.xlu1 %v352_v26, %s4337_s5  ;;  %v4016_v27 = vpop.f32.mrb[45].mxu0  ;;  %v2610_v23 = vsel %vm171_vm0, %v4740_v19, 0.0 }
 0xdd2   : > { %2611 = vadd.xlane.f32.xlu0 %v2610_v23  ;;  %v4793_v23 = vadd.f32 %v4715_v59, %v4485_v44 }
 0xde8   : > { %2914 = vrot.lane.b32.xlu0 %v352_v26, %s4338_s6 }
 0xe11   : > { %v2719_v38 = vpop.f32.mrb[18].mxu1 }
 0xe12   : > { %v2723_v28 = vmul.f32 %v4749_v21, %v2719_v38  ;;  %v4021_v40 = vpop.f32.mrb[19].mxu1 }
 0xe14   : > { %4025 = vmatmul.mubr.msk.f32.vlgmr.msra.gmra.mrb[46].mxu0 %vm446_vm2, %v2723_v28 }
 0xe15   : > { %4034 = vmatprep.mubr.msk.f32.mxu0 %vm4336_vm1, %v4335_v22 }
 0xe4d   : > { %v2248_v29 = vpop.xlane.xlu1 %2247 }
 0xe4e   : > { %v2249_v30 = vrot.slane %v2248_v29, 4 }
 0xe50   : > { %v2250_v32 = vadd.f32 %v2249_v30, %v2248_v29 }
 0xe51   : > { %v2838_v33 = vpop.permute.xlu1 %2837 }
 0xe52   : > { %v2251_v42 = vrot.slane %v2250_v32, 2  ;;  %4028 = vmatpush3.xpose.msk.msra.mxu1 %vm171_vm0, %v2838_v33 }
 0xe53   : > { %4037 = vmatprep.subr.mxu1 %v4335_v22 }
 0xe54   : > { %v2252_v43 = vadd.f32 %v2251_v42, %v2250_v32  ;;  %v3407_v32 = vld [vmem:[#allocation2 + $0x8] sm:$0xff]  ;;  %v3406_v42 = vld [vmem:[#allocation2] sm:$0xff] }
 0xe55   : > { %4030 = vmatmul.mubr.msk.f32.vlgmr.msra.gmra.mrb[20].mxu1 %vm171_vm0, %v352_v26 }
 0xe56   : > { %v2253_v47 = vrot.slane %v2252_v43, 1  ;;  %4039 = vmatprep.mubr.msk.f32.mxu1 %vm4336_vm1, %v4335_v22 }
 0xe58   : > { %v2254_v48 = vadd.f32 %v2253_v47, %v2252_v43 }
 0xe5a   : > { %4204 = vpush %v2254_v48  ;;  %v4100_v48 = vpack.c.bf16 %v3407_v32, %v3406_v42 }
 0xe5f   : > { %v2612_v35 = vpop.xlane.xlu0 %2611 }
 0xe60   : > { %v2613_v12 = vrot.slane %v2612_v35, 4 }
 0xe62   : > { %v2614_v13 = vadd.f32 %v2613_v12, %v2612_v35 }
 0xe63   : > { %v2915_v14 = vpop.permute.xlu0 %2914 }
 0xe64   : > { %4033 = vmatpush3.msra.mxu0 %v2915_v14  ;;  %v2615_v15 = vrot.slane %v2614_v13, 2  ;;  %v3409_v14 = vld [vmem:[#allocation2 + $0x18] sm:$0xff] }
 0xe65   : > { %4042 = vmatprep.subr.mxu0 %v4335_v22 }
 0xe66   : > { %v2616_v17 = vadd.f32 %v2615_v15, %v2614_v13 }
 0xe68   : > { %v2617_v34 = vrot.slane %v2616_v17, 1 }
 0xe6a   : > { %v2618_v5 = vadd.f32 %v2617_v34, %v2616_v17 }
 0xe8b   : > { %s4205_s11 = spop %4204 }
 0xe8c   : > { %s2258_s14 = smul.f32 0.00390625, %s4205_s11 }
 0xe8e   : > { %s2259_s15 = sadd.f32 1e-05, %s2258_s14 }
 0xe90   : > { %v2260_v52 = vstv %s2259_s15 }
 0xe91   : > { %4295 = vrsqrt.f32 %v2260_v52 }
 0xe9b   : > { %v4296_v55 = vpop.eup %4295 }
 0xe9c   : > { %4206 = vpush %v4296_v55  ;;  %v4112_v55 = vpack.c.bf16 %v3411_v53, %v3410_v54 }
 0xe9d   : > { %4208 = vpush %v2428_v56  ;;  %v3413_v56 = vld [vmem:[#allocation2 + $0x38] sm:$0xff] }
 0xecd   : > { %s4207_s18 = spop %4206 }
 0xece   : > { %v2263_v58 = vstv %s4207_s18  ;;  %s4209_s19 = spop %4208 }
 0xecf   : > { %v2264_v37 = vmul.f32 %v2263_v58, %v2244_v36  ;;  %s2432_s20 = smul.f32 0.00390625, %s4209_s19  ;;  %v3412_v58 = vld [vmem:[#allocation2 + $0x30] sm:$0xff] }
 0xed1   : > { %2265 = vst.msk [vmem:[#allocation2 + $0x48] sm:$0xff] %vm171_vm0, %v2264_v37  ;;  %v2433_v60 = vstv %s2432_s20  ;;  %v4118_v37 = vpack.c.bf16 %v3413_v56, %v3412_v58 }
 0xed2   : > { %v2434_v61 = vsub.f32 %v4719_v39, %v2433_v60 }
 0xed4   : > { %v2435_v62 = vmul.f32 %v2434_v61, %v2434_v61 }
 0xed6   : > { %v2436_v57 = vsel %vm171_vm0, %v2435_v62, 0.0 }
 0xed7   : > { %2437 = vadd.xlane.f32.xlu1 %v2436_v57 }
 0xed8   : > { %v3415_v60 = vld [vmem:[#allocation2 + $0x48] sm:$0xff] }
 0xee7   : > { %v4766_v0 = vpop.f32.mrb[46].mxu0 }
 0xee8   : > { %3027 = vrot.lane.b32.xlu1 %v357_v63, %s4337_s5  ;;  %v4026_v1 = vpop.f32.mrb[47].mxu0  ;;  %v2800_v41 = vsel %vm171_vm0, %v4766_v0, 0.0 }
 0xee9   : > { %2801 = vadd.xlane.f32.xlu0 %v2800_v41 }
 0xeff   : > { %3104 = vrot.lane.b32.xlu0 %v357_v63, %s4338_s6 }
 0xf28   : > { %v2909_v2 = vpop.f32.mrb[20].mxu1 }
 0xf29   : > { %v2913_v39 = vmul.f32 %v4749_v21, %v2909_v2  ;;  %v4031_v3 = vpop.f32.mrb[21].mxu1 }
 0xf2b   : > { %4035 = vmatmul.mubr.msk.f32.vlgmr.msra.gmra.mrb[48].mxu0 %vm446_vm2, %v2913_v39 }
 0xf2c   : > { %4044 = vmatprep.mubr.msk.f32.mxu0 %vm4336_vm1, %v4335_v22 }
 0xf64   : > { %v2438_v45 = vpop.xlane.xlu1 %2437 }
 0xf65   : > { %v2439_v4 = vrot.slane %v2438_v45, 4 }
 0xf67   : > { %v2440_v6 = vadd.f32 %v2439_v4, %v2438_v45 }
 0xf68   : > { %v3028_v7 = vpop.permute.xlu1 %3027 }
 0xf69   : > { %v2441_v8 = vrot.slane %v2440_v6, 2  ;;  %4038 = vmatpush3.xpose.msk.msra.mxu1 %vm171_vm0, %v3028_v7 }
 0xf6a   : > { %4047 = vmatprep.subr.mxu1 %v4335_v22 }
 0xf6b   : > { %v2442_v46 = vadd.f32 %v2441_v8, %v2440_v6 }
 0xf6c   : > { %4040 = vmatmul.mubr.msk.f32.vlgmr.msra.gmra.mrb[22].mxu1 %vm171_vm0, %v357_v63 }
 0xf6d   : > { %v2443_v9 = vrot.slane %v2442_v46, 1  ;;  %4049 = vmatprep.mubr.msk.f32.mxu1 %vm4336_vm1, %v4335_v22 }
 0xf6f   : > { %v2444_v31 = vadd.f32 %v2443_v9, %v2442_v46 }
 0xf71   : > { %4210 = vpush %v2444_v31 }
 0xf76   : > { %v4781_v10 = vpop.xlane.xlu0 %2801 }
 0xf77   : > { %v2803_v57 = vrot.slane %v4781_v10, 4 }
 0xf79   : > { %v2804_v63 = vadd.f32 %v2803_v57, %v4781_v10 }
 0xf7a   : > { %v3105_v11 = vpop.permute.xlu0 %3104 }
 0xf7b   : > { %4043 = vmatpush3.msra.mxu0 %v3105_v11  ;;  %v2805_v1 = vrot.slane %v2804_v63, 2 }
 0xf7c   : > { %4052 = vmatprep.subr.mxu0 %v4335_v22 }
 0xf7d   : > { %v2806_v2 = vadd.f32 %v2805_v1, %v2804_v63 }
 0xf7f   : > { %v2807_v39 = vrot.slane %v2806_v2, 1 }
 0xf81   : > { %v2808_v45 = vadd.f32 %v2807_v39, %v2806_v2 }
 0xfa2   : > { %s4211_s21 = spop %4210 }
 0xfa3   : > { %s2448_s22 = smul.f32 0.00390625, %s4211_s21 }
 0xfa5   : > { %s2449_s23 = sadd.f32 1e-05, %s2448_s22 }
 0xfa7   : > { %v2450_v16 = vstv %s2449_s23 }
 0xfa8   : > { %4297 = vrsqrt.f32 %v2450_v16 }
 0xfb2   : > { %v4298_v18 = vpop.eup %4297 }
 0xfb3   : > { %4212 = vpush %v4298_v18 }
 0xfb4   : > { %4214 = vpush %v2618_v5 }
 0xfe4   : > { %s4213_s24 = spop %4212 }
 0xfe5   : > { %v2453_v20 = vstv %s4213_s24  ;;  %s4215_s25 = spop %4214 }
 0xfe6   : > { %v2454_v36 = vmul.f32 %v2453_v20, %v2434_v61  ;;  %s2622_s26 = smul.f32 0.00390625, %s4215_s25  ;;  %v3414_v61 = vld [vmem:[#allocation2 + $0x40] sm:$0xff] }
 0xfe7   : > { %v4124_v62 = vpack.c.bf16 %v3415_v60, %v3414_v61 }
 0xfe8   : > { %2455 = vst.msk [vmem:[#allocation2 + $0x50] sm:$0xff] %vm171_vm0, %v2454_v36  ;;  %v2623_v24 = vstv %s2622_s26 }
 0xfe9   : > { %v4786_v25 = vsub.f32 %v4740_v19, %v2623_v24 }
 0xfeb   : > { %v2625_v26 = vmul.f32 %v4786_v25, %v4786_v25 }
 0xfed   : > { %v2626_v27 = vsel %vm171_vm0, %v2625_v26, 0.0 }
 0xfee   : > { %2627 = vadd.xlane.f32.xlu1 %v2626_v27 }
 0xfef   : > { %v3416_v31 = vld [vmem:[#allocation2 + $0x50] sm:$0xff] }
 0xffe   : > { %v4795_v38 = vpop.f32.mrb[48].mxu0 }
 0xfff   : > { %3217 = vrot.lane.b32.xlu1 %v4793_v23, %s4337_s5  ;;  %v4036_v28 = vpop.f32.mrb[49].mxu0  ;;  %v2990_v19 = vsel %vm171_vm0, %v4795_v38, 0.0 }
0x1000   : > { %2991 = vadd.xlane.f32.xlu0 %v2990_v19 }
0x103f   : > { %v3099_v40 = vpop.f32.mrb[22].mxu1 }
0x1040   : > { %v3103_v29 = vmul.f32 %v4749_v21, %v3099_v40  ;;  %v4041_v30 = vpop.f32.mrb[23].mxu1 }
0x1042   : > { %4045 = vmatmul.mubr.msk.f32.vlgmr.msra.gmra.mrb[50].mxu0 %vm446_vm2, %v3103_v29 }
0x1043   : > { %4054 = vmatprep.mubr.msk.f32.mxu0 %vm4336_vm1, %v4335_v22  ;;  %v3408_v22 = vld [vmem:[#allocation2 + $0x10] sm:$0xff] }
0x1044   : > { %v4106_v50 = vpack.c.bf16 %v3409_v14, %v3408_v22 }
0x107b   : > { %v2628_v44 = vpop.xlane.xlu1 %2627 }
0x107c   : > { %v2629_v59 = vrot.slane %v2628_v44, 4 }
0x107e   : > { %v2630_v33 = vadd.f32 %v2629_v59, %v2628_v44 }
0x107f   : > { %v3218_v47 = vpop.permute.xlu1 %3217 }
0x1080   : > { %v2631_v35 = vrot.slane %v2630_v33, 2  ;;  %4048 = vmatpush3.xpose.msk.msra.mxu1 %vm171_vm0, %v3218_v47 }
0x1081   : > { %4102 = vmatprep.subr.msk.bf16.mxu1 %vm4807_vm3, %v4100_v48 }
0x1082   : > { %v2632_v49 = vadd.f32 %v2631_v35, %v2630_v33 }
0x1083   : > { %4050 = vmatmul.mubr.msk.f32.vlgmr.msra.gmra.mrb[24].mxu1 %vm171_vm0, %v4793_v23 }
0x1084   : > { %4105 = vmatpush3.bf16.xpose.msk.msra.mxu1 %vm4807_vm3, %v4100_v48  ;;  %v2633_v51 = vrot.slane %v2632_v49, 1 }
0x1085   : > { %4108 = vmatprep.subr.msk.bf16.mxu1 %vm4807_vm3, %v4106_v50 }
0x1086   : > { %v2634_v52 = vadd.f32 %v2633_v51, %v2632_v49 }
0x1088   : > { %4216 = vpush %v2634_v52 }
0x108c   : > { %4111 = vmatpush3.bf16.xpose.msk.msra.mxu1 %vm4807_vm3, %v4106_v50 }
0x108d   : > { %4114 = vmatprep.subr.msk.bf16.mxu1 %vm4807_vm3, %v4112_v55 }
0x1094   : > { %4117 = vmatpush3.bf16.xpose.msk.msra.mxu1 %vm4807_vm3, %v4112_v55 }
0x1095   : > { %4120 = vmatprep.subr.msk.bf16.mxu1 %vm4807_vm3, %v4118_v37 }
0x109c   : > { %4123 = vmatpush3.bf16.xpose.msk.msra.mxu1 %vm4807_vm3, %v4118_v37 }
0x109d   : > { %4126 = vmatprep.subr.msk.bf16.mxu1 %vm4807_vm3, %v4124_v62 }
0x10a4   : > { %4129 = vmatpush3.bf16.xpose.msk.msra.mxu1 %vm4807_vm3, %v4124_v62 }
0x10b9   : > { %s4217_s5 = spop %4216 }
0x10ba   : > { %s2638_s27 = smul.f32 0.00390625, %s4217_s5 }
0x10bc   : > { %s2639_s28 = sadd.f32 1e-05, %s2638_s27 }
0x10be   : > { %v2640_v41 = vstv %s2639_s28 }
0x10bf   : > { %4299 = vrsqrt.f32 %v2640_v41 }
0x10c9   : > { %v4300_v3 = vpop.eup %4299 }
0x10ca   : > { %4218 = vpush %v4300_v3 }
0x10cb   : > { %4220 = vpush %v2808_v45 }
0x10fb   : > { %s4219_s29 = spop %4218 }
0x10fc   : > { %v2643_v4 = vstv %s4219_s29  ;;  %s4221_s30 = spop %4220 }
0x10fd   : > { %v2644_v6 = vmul.f32 %v2643_v4, %v4786_v25  ;;  %s2812_s3 = smul.f32 0.00390625, %s4221_s30  ;;  %v2992_v25 = vpop.xlane.xlu0 %2991 }
0x10fe   : > { %v2993_v26 = vrot.slane %v2992_v25, 4 }
0x10ff   : > { %2645 = vst.msk [vmem:[#allocation2 + $0x58] sm:$0xff] %vm171_vm0, %v2644_v6  ;;  %v2813_v7 = vstv %s2812_s3 }
0x1100   : > { %v2814_v8 = vsub.f32 %v4766_v0, %v2813_v7  ;;  %v2994_v27 = vadd.f32 %v2993_v26, %v2992_v25 }
0x1102   : > { %v2815_v46 = vmul.f32 %v2814_v8, %v2814_v8  ;;  %v2995_v28 = vrot.slane %v2994_v27, 2 }
0x1104   : > { %v2816_v9 = vsel %vm171_vm0, %v2815_v46, 0.0  ;;  %v2996_v40 = vadd.f32 %v2995_v28, %v2994_v27 }
0x1105   : > { %2817 = vadd.xlane.f32.xlu1 %v2816_v9 }
0x1106   : > { %v3417_v10 = vld [vmem:[#allocation2 + $0x58] sm:$0xff]  ;;  %v2997_v29 = vrot.slane %v2996_v40, 1 }
0x1107   : > { %v4130_v11 = vpack.c.bf16 %v3417_v10, %v3416_v31 }
0x1108   : > { %v2998_v44 = vadd.f32 %v2997_v29, %v2996_v40 }
0x1109   : > { %4132 = vmatprep.subr.msk.bf16.mxu1 %vm4807_vm3, %v4130_v11 }
0x110a   : > { %4135 = vmatpush3.bf16.xpose.msk.msra.mxu1 %vm4807_vm3, %v4130_v11 }
0x1115   : > { %v4844_v12 = vpop.f32.mrb[50].mxu0 }
0x1116   : > { %v4046_v13 = vpop.f32.mrb[51].mxu0  ;;  %v3180_v15 = vsel %vm171_vm0, %v4844_v12, 0.0 }
0x1117   : > { %3181 = vadd.xlane.f32.xlu0 %v3180_v15 }
0x1156   : > { %v3289_v0 = vpop.f32.mrb[24].mxu1 }
0x1157   : > { %v4051_v16 = vpop.f32.mrb[25].mxu1  ;;  %v3293_v49 = vmul.f32 %v4749_v21, %v3289_v0 }
0x1192   : > { %v2818_v17 = vpop.xlane.xlu1 %2817 }
0x1193   : > { %v2819_v34 = vrot.slane %v2818_v17, 4 }
0x1195   : > { %v2820_v18 = vadd.f32 %v2819_v34, %v2818_v17 }
0x1197   : > { %v2821_v5 = vrot.slane %v2820_v18, 2 }
0x1199   : > { %v2822_v20 = vadd.f32 %v2821_v5, %v2820_v18 }
0x119b   : > { %v2823_v36 = vrot.slane %v2822_v20, 1 }
0x119d   : > { %v2824_v24 = vadd.f32 %v2823_v36, %v2822_v20 }
0x119f   : > { %4222 = vpush %v2824_v24 }
0x11a4   : > { %v3182_v54 = vpop.xlane.xlu0 %3181 }
0x11a5   : > { %v3183_v55 = vrot.slane %v3182_v54, 4 }
0x11a7   : > { %v3184_v56 = vadd.f32 %v3183_v55, %v3182_v54 }
0x11d0   : > { %s4223_s4 = spop %4222 }
0x11d1   : > { %s2828_s7 = smul.f32 0.00390625, %s4223_s4 }
0x11d3   : > { %s2829_s8 = sadd.f32 1e-05, %s2828_s7 }
0x11d5   : > { %v2830_v19 = vstv %s2829_s8 }
0x11d6   : > { %4301 = vrsqrt.f32 %v2830_v19 }
0x11e0   : > { %v4302_v30 = vpop.eup %4301 }
0x11e1   : > { %4224 = vpush %v4302_v30 }
0x11e2   : > { %4226 = vpush %v2998_v44 }
0x1212   : > { %s4225_s11 = spop %4224 }
0x1213   : > { %v2833_v59 = vstv %s4225_s11  ;;  %s4227_s14 = spop %4226 }
0x1214   : > { %v2834_v32 = vmul.f32 %v2833_v59, %v2814_v8  ;;  %s3002_s15 = smul.f32 0.00390625, %s4227_s14 }
0x1216   : > { %2835 = vst.msk [vmem:[#allocation2 + $0x60] sm:$0xff] %vm171_vm0, %v2834_v32  ;;  %v3003_v33 = vstv %s3002_s15 }
0x1217   : > { %v3004_v42 = vsub.f32 %v4795_v38, %v3003_v33  ;;  %v160_v33 = vld [vmem:[%s4905_s1 + $0x20] sm:$0xff] }
0x1218   : > { %4089 = vmatprep.mubr.msk.f32.mxu1 %vm171_vm0, %v160_v33 }
0x1219   : > { %v3005_v47 = vmul.f32 %v3004_v42, %v3004_v42 }
0x121b   : > { %v3006_v48 = vsel %vm171_vm0, %v3005_v47, 0.0  ;;  %v163_v47 = vld [vmem:[%s4905_s1 + $0x38] sm:$0xff] }
0x121c   : > { %3007 = vadd.xlane.f32.xlu1 %v3006_v48  ;;  %v4339_v48 = vmov 0  }
0x121d   : > { %v3418_v39 = vld [vmem:[#allocation2 + $0x60] sm:$0xff]  ;;  %4276 = vset.pattern.permute.xlu1 %v4339_v48  ;;  %4275 = vset.pattern.permute.xlu0 %v4339_v48 }
0x122d   : > { %3294 = vrot.lane.b32.xlu1 %v4793_v23, %s4338_s6  ;;  %v3185_v23 = vrot.slane %v3184_v56, 2 }
0x122f   : > { %v3186_v37 = vadd.f32 %v3185_v23, %v3184_v56 }
0x1231   : > { %v3187_v21 = vrot.slane %v3186_v37, 1 }
0x1233   : > { %v3188_v61 = vadd.f32 %v3187_v21, %v3186_v37 }
0x12a9   : > { %v3008_v35 = vpop.xlane.xlu1 %3007 }
0x12aa   : > { %v3009_v14 = vrot.slane %v3008_v35, 4 }
0x12ac   : > { %v3010_v22 = vadd.f32 %v3009_v14, %v3008_v35  ;;  %v165_v14 = vld [vmem:[%s4905_s1 + $0x48] sm:$0x1] }
0x12ad   : > { %v3295_v50 = vpop.permute.xlu1 %3294 }
0x12ae   : > { %v3011_v51 = vrot.slane %v3010_v22, 2  ;;  %4053 = vmatpush3.msra.mxu0 %v3295_v50 }
0x12af   : > { %4055 = vmatmul.mubr.msk.f32.vlgmr.msra.gmra.mrb[52].mxu0 %vm446_vm2, %v3293_v49 }
0x12b0   : > { %v3012_v52 = vadd.f32 %v3011_v51, %v3010_v22 }
0x12b2   : > { %v3013_v53 = vrot.slane %v3012_v52, 1 }
0x12b4   : > { %v3014_v38 = vadd.f32 %v3013_v53, %v3012_v52 }
0x12b6   : > { %4228 = vpush %v3014_v38  ;;  %v161_v38 = vld [vmem:[%s4905_s1 + $0x28] sm:$0xff] }
0x12e7   : > { %s4229_s18 = spop %4228 }
0x12e8   : > { %s3018_s19 = smul.f32 0.00390625, %s4229_s18 }
0x12ea   : > { %s3019_s6 = sadd.f32 1e-05, %s3018_s19 }
0x12ec   : > { %v3020_v58 = vstv %s3019_s6 }
0x12ed   : > { %4303 = vrsqrt.f32 %v3020_v58 }
0x12f7   : > { %v4304_v60 = vpop.eup %4303 }
0x12f8   : > { %4230 = vpush %v4304_v60 }
0x12f9   : > { %4232 = vpush %v3188_v61 }
0x1329   : > { %s4231_s20 = spop %4230 }
0x132a   : > { %v3023_v62 = vstv %s4231_s20  ;;  %s4233_s21 = spop %4232 }
0x132b   : > { %v3024_v57 = vmul.f32 %v3023_v62, %v3004_v42  ;;  %s3192_s22 = smul.f32 0.00390625, %s4233_s21  ;;  %v164_v42 = vld [vmem:[%s4905_s1 + $0x40] sm:$0xff]  ;;  %s131_s21 = sand.u32 1, %s4325_s9  }
0x132c   : > { %s3760_s9 = sshll.u32 (%p4380_p4), %s4368_s12, 3 }
0x132d   : > { %3025 = vst.msk [vmem:[#allocation2 + $0x68] sm:$0xff] %vm171_vm0, %v3024_v57  ;;  %v3193_v63 = vstv %s3192_s22 }
0x132e   : > { %v3194_v1 = vsub.f32 %v4844_v12, %v3193_v63 }
0x1330   : > { %v3195_v41 = vmul.f32 %v3194_v1, %v3194_v1 }
0x1332   : > { %v3196_v2 = vsel %vm171_vm0, %v3195_v41, 0.0 }
0x1333   : > { %3197 = vadd.xlane.f32.xlu1 %v3196_v2 }
0x1334   : > { %v3419_v3 = vld [vmem:[#allocation2 + $0x68] sm:$0xff] }
0x1335   : > { %v4136_v45 = vpack.c.bf16 %v3419_v3, %v3418_v39 }
0x1337   : > { %4138 = vmatprep.subr.msk.bf16.mxu1 %vm4807_vm3, %v4136_v45 }
0x1338   : > { %4141 = vmatpush3.bf16.xpose.msk.msra.mxu1 %vm4807_vm3, %v4136_v45 }
0x1344   : > { %3429 = vperm.xlu1 %4276, %v164_v42  }
0x1382   : > { %v3366_v4 = vpop.f32.mrb[52].mxu0 }
0x1383   : > { %v4056_v6 = vpop.f32.mrb[53].mxu0  ;;  %v3370_v7 = vsel %vm171_vm0, %v3366_v4, 0.0 }
0x1384   : > { %3371 = vadd.xlane.f32.xlu0 %v3370_v7 }
0x13c0   : > { %v3198_v8 = vpop.xlane.xlu1 %3197 }
0x13c1   : > { %v3199_v46 = vrot.slane %v3198_v8, 4 }
0x13c3   : > { %v3200_v9 = vadd.f32 %v3199_v46, %v3198_v8 }
0x13c4   : > { %v3430_v54 = vpop.permute.xlu1 %3429 }
0x13c5   : > { %v3201_v31 = vrot.slane %v3200_v9, 2 }
0x13c7   : > { %v3202_v10 = vadd.f32 %v3201_v31, %v3200_v9 }
0x13c9   : > { %v3203_v11 = vrot.slane %v3202_v10, 1 }
0x13cb   : > { %v3204_v12 = vadd.f32 %v3203_v11, %v3202_v10 }
0x13cd   : > { %4234 = vpush %v3204_v12 }
0x13fe   : > { %s4235_s23 = spop %4234 }
0x13ff   : > { %s3208_s24 = smul.f32 0.00390625, %s4235_s23  ;;  %s3673_s23 = sshll.u32 %s131_s21, 4 }
0x1401   : > { %s3209_s25 = sadd.f32 1e-05, %s3208_s24  ;;  %s133_s24 = scalar_lea.vmem [#allocation3], %s3673_s23 }
0x1403   : > { %v3210_v13 = vstv %s3209_s25 }
0x1404   : > { %4305 = vrsqrt.f32 %v3210_v13 }
0x140e   : > { %v4306_v15 = vpop.eup %4305 }
0x140f   : > { %4236 = vpush %v4306_v15 }
0x1411   : > { %v3372_v0 = vpop.xlane.xlu0 %3371 }
0x1412   : > { %v3373_v16 = vrot.slane %v3372_v0, 4 }
0x1414   : > { %v3374_v17 = vadd.f32 %v3373_v16, %v3372_v0 }
0x1416   : > { %v3375_v34 = vrot.slane %v3374_v17, 2 }
0x1418   : > { %v3376_v18 = vadd.f32 %v3375_v34, %v3374_v17 }
0x141a   : > { %v3377_v5 = vrot.slane %v3376_v18, 1 }
0x141c   : > { %v3378_v20 = vadd.f32 %v3377_v5, %v3376_v18 }
0x141e   : > { %4238 = vpush %v3378_v20 }
0x1440   : > { %s4237_s26 = spop %4236 }
0x1441   : > { %v3213_v36 = vstv %s4237_s26 }
0x1442   : > { %v3214_v24 = vmul.f32 %v3213_v36, %v3194_v1 }
0x1444   : > { %3215 = vst.msk [vmem:[#allocation2 + $0x70] sm:$0xff] %vm171_vm0, %v3214_v24 }
0x144b   : > { %v3420_v51 = vld [vmem:[#allocation2 + $0x70] sm:$0xff] }
0x144f   : > { %s4239_s5 = spop %4238 }
0x1450   : > { %s3382_s27 = smul.f32 0.00390625, %s4239_s5  ;;  %s3581_s5 = scalar_lea.vmem (%p4380_p4), %s4906_s2, %s3760_s9 }
0x1452   : > { %v3383_v25 = vstv %s3382_s27 }
0x1453   : > { %v3384_v26 = vsub.f32 %v3366_v4, %v3383_v25 }
0x1455   : > { %v3385_v27 = vmul.f32 %v3384_v26, %v3384_v26 }
0x1457   : > { %v3386_v28 = vsel %vm171_vm0, %v3385_v27, 0.0 }
0x1458   : > { %3387 = vadd.xlane.f32.xlu0 %v3386_v28 }
0x146e   : > { %3424 = vperm.xlu0 %4275, %v163_v47  }
0x14e5   : > { %v3388_v19 = vpop.xlane.xlu0 %3387 }
0x14e6   : > { %v3389_v40 = vrot.slane %v3388_v19, 4 }
0x14e8   : > { %v3390_v29 = vadd.f32 %v3389_v40, %v3388_v19 }
0x14ea   : > { %v3391_v30 = vrot.slane %v3390_v29, 2 }
0x14ec   : > { %v3392_v44 = vadd.f32 %v3391_v30, %v3390_v29 }
0x14ed   : > { %v3425_v55 = vpop.permute.xlu0 %3424 }
0x14ee   : > { %v3393_v59 = vrot.slane %v3392_v44, 1 }
0x14f0   : > { %v3394_v32 = vadd.f32 %v3393_v59, %v3392_v44 }
0x14f2   : > { %4240 = vpush %v3394_v32 }
0x1523   : > { %s4241_s8 = spop %4240 }
0x1524   : > { %s3398_s11 = smul.f32 0.00390625, %s4241_s8 }
0x1526   : > { %s3399_s14 = sadd.f32 1e-05, %s3398_s11 }
0x1528   : > { %v3400_v35 = vstv %s3399_s14 }
0x1529   : > { %4307 = vrsqrt.f32 %v3400_v35 }
0x1533   : > { %v4308_v22 = vpop.eup %4307 }
0x1534   : > { %4242 = vpush %v4308_v22 }
0x1535   : > { %4244 = vpush %v165_v14 }
0x1565   : > { %s4243_s19 = spop %4242 }
0x1566   : > { %v3403_v49 = vstv %s4243_s19  ;;  %s4245_s22 = spop %4244 }
0x1567   : > { %v3404_v50 = vmul.f32 %v3403_v49, %v3384_v26  ;;  %v3565_v23 = vstv %s4245_s22 }
0x1569   : > { %3405 = vst.msk [vmem:[#allocation2 + $0x78] sm:$0xff] %vm171_vm0, %v3404_v50 }
0x1570   : > { %v3421_v52 = vld [vmem:[#allocation2 + $0x78] sm:$0xff] }
0x1571   : > { %v4142_v53 = vpack.c.bf16 %v3421_v52, %v3420_v51 }
0x1573   : > { %4144 = vmatprep.subr.msk.bf16.mxu1 %vm4807_vm3, %v4142_v53 }
0x1574   : > { %4147 = vmatpush3.bf16.xpose.msk.msra.mxu1 %vm4807_vm3, %v4142_v53 }
0x157b   : > { %4090 = vmatmul.mubr.msk.f32.vlgmr.msra.gmra.mrb[26].mxu1 %vm171_vm0, %v161_v38 }
0x164e   : > { %v4091_v56 = vpop.f32.mrb[26].mxu1 }
0x164f   : > { %v3558_v58 = vadd.f32 %v4091_v56, %v3430_v54  ;;  %v3552_v37 = vpop.f32.mrb[27].mxu1  ;;  %3579 = sbr.rel (!%p4380_p4) target bundleno = 5726 (0x165e), region = 32 }
0x1650   : > { %v3553_v21 = vadd.f32 %v3552_v37, %v3425_v55 }
0x1651   : > { %vm3562_vm4 = vcmp.ge.f32.partialorder %v3558_v58, 0.0  ;;  %v3568_v60 = vmul.f32 %v3565_v23, %v3558_v58 }
0x1652   : > { %vm3561_vm5 = vcmp.ge.f32.partialorder %v3553_v21, 0.0  ;;  %v3567_v43 = vmul.f32 %v3565_v23, %v3553_v21 }
0x1653   : > { %v3570_v61 = vsel %vm3562_vm4, %v3558_v58, %v3568_v60 }
0x1654   : > { %v3569_v62 = vsel %vm3561_vm5, %v3553_v21, %v3567_v43  ;;  %3572 = vst [vmem:[%s133_s24 + $0x8] sm:$0xff] %v3570_v61 }
0x1655   : > { %3571 = vst [vmem:[%s133_s24] sm:$0xff] %v3569_v62 }
0x165b   : > { %v3613_v63 = vld [vmem:[%s133_s24 + $0x8] sm:$0xff] }
0x165c   : > { %v3611_v57 = vld [vmem:[%s133_s24] sm:$0xff]  ;;  %3614 = vst [vmem:[%s3581_s5 + $0x20] sm:$0xff] %v3613_v63 }
0x165d   : > { %3612 = vst [vmem:[%s3581_s5] sm:$0xff] %v3611_v57 }
0x165e PF: > { %p9_p8 = scmp.ge.s32.totalorder %s4370_s13, 6   ;;  %s4910_s9 = smov %s4329_s10 }
0x165f   : > { %s4911_s10 = smov %s4378_s16  ;;  %s4912_s11 = smov %s4370_s13 }
0x1660   :  { %11 = sbr.rel (!%p9_p8) target bundleno = 2 (0x2), region = 96 }

</bundles_post_ra>
